<compile_context>
chip_gen: v6e
topology: v6e:2x2x1
jax: 0.10.0
libtpu: 0.0.40
codegen_flags: <defaults>
</compile_context>

<pallas_src>
import functools

import jax
import jax.numpy as jnp
from jax.experimental import pallas as pl
from jax.experimental.pallas import tpu as pltpu

INPUT_DIM = 155
HIDDEN = [128, 64, 32]
PATH_DIM = 32
LABEL_DIM = 1

_SUBLANE = 16   # batch-tile granularity (bf16 feature tile uses (16,128) native tiling)
_LANE = 128


def _round_up(n, m):
    return ((n + m - 1) // m) * m


def _silu(x, bf16_eup):
    # SiLU(x) = x * sigmoid(x) = x / (1 + exp(-x)).
    # exp on the EUP (bf16 operand on v6e/v7x), reciprocal as an approx EUP op
    # instead of a full-precision VPU divide; mul/add stay f32 on the VPU.
    neg = -x
    if bf16_eup:
        neg = neg.astype(jnp.bfloat16)
    e = jnp.exp(neg).astype(jnp.float32)
    return x * pl.reciprocal(1.0 + e, approx=True)


def pathnet_panu_kernel(x_ref,
                        w1_ref, b1_ref,
                        w2_ref, b2_ref,
                        w3_ref, b3_ref,
                        wc_ref, bc_ref,
                        feat_ref, out_ref,
                        *, bf16_eup):
    cd = w1_ref.dtype  # MXU operand dtype (bf16 by default)

    # x arrives as f32; cast in-register (hidden under the tile DMA) so the
    # wrapper never materializes a second copy of x in HBM.
    x = x_ref[...].astype(cd)

    # encoder1: Linear(155 -> 128) + SiLU   (AlphaDropout = identity at eval)
    h1 = jnp.dot(x, w1_ref[...], preferred_element_type=jnp.float32) + b1_ref[...]
    h1 = _silu(h1, bf16_eup)

    # encoder2: Linear(128 -> 64) + SiLU
    h2 = jnp.dot(h1.astype(cd), w2_ref[...],
                 preferred_element_type=jnp.float32) + b2_ref[...]
    h2 = _silu(h2, bf16_eup)

    # encoder3: Linear(64 -> 32) + SiLU
    h3 = jnp.dot(h2.astype(cd), w3_ref[...],
                 preferred_element_type=jnp.float32) + b3_ref[...]
    h3 = _silu(h3, bf16_eup)

    feat_ref[...] = h3.astype(feat_ref.dtype)

    # classifier: Linear(32 -> 1), act=None -> VPU multiply + XLU cross-lane reduce.
    out = jnp.sum(h3 * wc_ref[...], axis=-1, keepdims=True) + bc_ref[...]
    out_ref[...] = out.astype(out_ref.dtype)


def pathnet_panu_forward(x, params, *, block_b=2048, use_bf16=True,
                         feat_dtype=jnp.bfloat16):
    """x: [B, 155] float32. Returns (features [B, 32] feat_dtype, out [B, 1] f32)."""
    B = x.shape[0]
    assert x.shape[1] == INPUT_DIM

    # Batch tile: multiple of 16 sublanes, capped at block_b. No wrapper-side
    # padding: grid = cdiv(B, tb) and Pallas masks the ragged last block.
    tb = min(_round_up(block_b, _SUBLANE), _round_up(B, _SUBLANE))
    # When the batch is large, prefer >=8 grid steps (>=4 per TensorCore under
    # v7x megacore sharding) without dropping below 512 rows per tile.
    if B >= 8 * 512:
        tb = min(tb, max(512, _round_up(pl.cdiv(B, 8), _SUBLANE)))
    grid = (pl.cdiv(B, tb),)

    cd = jnp.bfloat16 if use_bf16 else jnp.float32
    w1 = params["w1"].astype(cd)
    w2 = params["w2"].astype(cd)
    w3 = params["w3"].astype(cd)
    b1, b2, b3 = params["b1"], params["b2"], params["b3"]
    wc_row = params["wc"].T.astype(jnp.float32)   # (1, 32) row for the VPU reduce
    bc = params["bc"].astype(jnp.float32)         # (1, 1)

    # VMEM budget from lane-padded, double-buffered per-step blocks (+ margin).
    lanes = lambda n: _round_up(n, _LANE)
    feat_itemsize = 2 if feat_dtype == jnp.bfloat16 else 4
    per_step = (tb * lanes(INPUT_DIM) * 4            # x tile, f32
                + tb * lanes(PATH_DIM) * feat_itemsize
                + tb * lanes(LABEL_DIM) * 4)         # out tile, f32
    vmem_limit = int(max(32 * 1024 * 1024, 2 * per_step + (4 << 20)))

    kernel = functools.partial(pathnet_panu_kernel, bf16_eup=use_bf16)

    def run(single_buffer_consts):
        if single_buffer_consts:
            # Constant index_maps -> DMA'd once; one buffer is enough.
            const = lambda shape: pl.BlockSpec(shape, lambda i: (0, 0),
                                               pipeline_mode=pl.Buffered(1))
        else:
            const = lambda shape: pl.BlockSpec(shape, lambda i: (0, 0))
        return pl.pallas_call(
            kernel,
            grid=grid,
            in_specs=[
                pl.BlockSpec((tb, INPUT_DIM), lambda i: (i, 0)),       # x tile (streamed)
                const((INPUT_DIM, HIDDEN[0])), const((1, HIDDEN[0])),  # W1, b1 (resident)
                const((HIDDEN[0], HIDDEN[1])), const((1, HIDDEN[1])),  # W2, b2
                const((HIDDEN[1], HIDDEN[2])), const((1, HIDDEN[2])),  # W3, b3
                const((1, PATH_DIM)), const((1, LABEL_DIM)),           # Wc (row), bc
            ],
            out_specs=(
                pl.BlockSpec((tb, PATH_DIM), lambda i: (i, 0)),
                pl.BlockSpec((tb, LABEL_DIM), lambda i: (i, 0)),
            ),
            out_shape=(
                jax.ShapeDtypeStruct((B, PATH_DIM), feat_dtype),
                jax.ShapeDtypeStruct((B, LABEL_DIM), jnp.float32),
            ),
            compiler_params=pltpu.CompilerParams(
                dimension_semantics=("parallel",),   # megacore sharding on v7x
                vmem_limit_bytes=vmem_limit,
            ),
        )(x, w1, b1, w2, b2, w3, b3, wc_row, bc)

    try:
        return run(single_buffer_consts=True)
    except Exception:
        # pipeline_mode=pl.Buffered(1) unavailable on this jax/Mosaic version:
        # fall back to default double-buffered constant operands.
        return run(single_buffer_consts=False)


def init_params(key):
    """Deterministic synthetic parameters (xavier-uniform-like); torch Linear
    weights transposed to [in, out] so the kernel computes x @ W + b."""
    def linear(k, fan_in, fan_out):
        kw, kb = jax.random.split(k)
        limit = (6.0 / (fan_in + fan_out)) ** 0.5
        w = jax.random.uniform(kw, (fan_in, fan_out), jnp.float32, -limit, limit)
        b = jax.random.uniform(kb, (1, fan_out), jnp.float32, -0.05, 0.05)
        return w, b

    k1, k2, k3, kc = jax.random.split(key, 4)
    w1, b1 = linear(k1, INPUT_DIM, HIDDEN[0])
    w2, b2 = linear(k2, HIDDEN[0], HIDDEN[1])
    w3, b3 = linear(k3, HIDDEN[1], HIDDEN[2])
    wc, bc = linear(kc, PATH_DIM, LABEL_DIM)
    return {"w1": w1, "b1": b1, "w2": w2, "b2": b2,
            "w3": w3, "b3": b3, "wc": wc, "bc": bc}


def reference_forward(x, p, *, use_bf16=True):
    """Pure-JAX reference with the same cast points as the kernel
    (bf16 matmul operands, bf16 exp; exact reciprocal instead of approx)."""
    cd = jnp.bfloat16 if use_bf16 else jnp.float32

    def silu(h):
        neg = (-h).astype(cd) if use_bf16 else -h
        return h / (1.0 + jnp.exp(neg).astype(jnp.float32))

    h = silu(jnp.dot(x.astype(cd), p["w1"].astype(cd),
                     preferred_element_type=jnp.float32) + p["b1"])
    h = silu(jnp.dot(h.astype(cd), p["w2"].astype(cd),
                     preferred_element_type=jnp.float32) + p["b2"])
    h = silu(jnp.dot(h.astype(cd), p["w3"].astype(cd),
                     preferred_element_type=jnp.float32) + p["b3"])
    out = jnp.sum(h * p["wc"].T, axis=-1, keepdims=True) + p["bc"]
    return h, out


if __name__ == "__main__":
    key = jax.random.PRNGKey(0)
    kp, kx = jax.random.split(key)
    params = init_params(kp)

    B = 22   # not a tile multiple -> exercises the ragged-last-block path
    # Only pa4 (PaNu) is consumed by the forward pass; pa1..pa3 are unused.
    pa1 = jax.random.normal(jax.random.fold_in(kx, 1), (B, INPUT_DIM), jnp.float32)
    pa2 = jax.random.normal(jax.random.fold_in(kx, 2), (B, INPUT_DIM), jnp.float32)
    pa3 = jax.random.normal(jax.random.fold_in(kx, 3), (B, INPUT_DIM), jnp.float32)
    pa4 = jax.random.normal(jax.random.fold_in(kx, 4), (B, INPUT_DIM), jnp.float32)

    # Small tile -> 2-step grid with a ragged final block.
    feat_small, out_small = pathnet_panu_forward(pa4, params, block_b=16)
    # Default tile (> B) -> single ragged block.
    feat_big, out_big = pathnet_panu_forward(pa4, params)
    jax.block_until_ready((feat_small, out_small, feat_big, out_big))

    ref_feat, ref_out = reference_forward(pa4, params)

    for feat, out in ((feat_small, out_small), (feat_big, out_big)):
        assert feat.shape == (B, PATH_DIM) and out.shape == (B, LABEL_DIM)
        f = feat.astype(jnp.float32)
        assert jnp.allclose(f, ref_feat, atol=2.5e-2, rtol=2.5e-2), \
            float(jnp.max(jnp.abs(f - ref_feat)))
        assert jnp.allclose(out, ref_out, atol=2.5e-2, rtol=2.5e-2), \
            float(jnp.max(jnp.abs(out - ref_out)))

    print("KERNEL_OK")
</pallas_src>

<mosaic_0001>
module attributes {stable_mosaic.version = 11 : i64} {
  func.func @pathnet_panu_kernel(%arg0: i32, %arg1: memref<16x155xf32, #tpu.memory_space<vmem>>, %arg2: memref<155x128xbf16, #tpu.memory_space<vmem>>, %arg3: memref<1x128xf32, #tpu.memory_space<vmem>>, %arg4: memref<128x64xbf16, #tpu.memory_space<vmem>>, %arg5: memref<1x64xf32, #tpu.memory_space<vmem>>, %arg6: memref<64x32xbf16, #tpu.memory_space<vmem>>, %arg7: memref<1x32xf32, #tpu.memory_space<vmem>>, %arg8: memref<1x32xf32, #tpu.memory_space<vmem>>, %arg9: memref<1x1xf32, #tpu.memory_space<vmem>>, %arg10: memref<16x32xbf16, #tpu.memory_space<vmem>>, %arg11: memref<16x1xf32, #tpu.memory_space<vmem>>) attributes {dimension_semantics = [#tpu.dimension_semantics<parallel>], iteration_bounds = array<i64: 2>, scalar_prefetch = 0 : i64, scratch_operands = 0 : i64, tpu.core_type = #tpu.core_type<tc>, window_params = [{transform_indices = @transform_0, window_bounds = array<i64: 16, 155>}, {pipeline_mode = #tpu.pipeline_mode<synchronous>, transform_indices = @transform_1, window_bounds = array<i64: 155, 128>}, {pipeline_mode = #tpu.pipeline_mode<synchronous>, transform_indices = @transform_2, window_bounds = array<i64: 1, 128>}, {pipeline_mode = #tpu.pipeline_mode<synchronous>, transform_indices = @transform_3, window_bounds = array<i64: 128, 64>}, {pipeline_mode = #tpu.pipeline_mode<synchronous>, transform_indices = @transform_4, window_bounds = array<i64: 1, 64>}, {pipeline_mode = #tpu.pipeline_mode<synchronous>, transform_indices = @transform_5, window_bounds = array<i64: 64, 32>}, {pipeline_mode = #tpu.pipeline_mode<synchronous>, transform_indices = @transform_6, window_bounds = array<i64: 1, 32>}, {pipeline_mode = #tpu.pipeline_mode<synchronous>, transform_indices = @transform_7, window_bounds = array<i64: 1, 32>}, {pipeline_mode = #tpu.pipeline_mode<synchronous>, transform_indices = @transform_8, window_bounds = array<i64: 1, 1>}, {transform_indices = @transform_9, window_bounds = array<i64: 16, 32>}, {transform_indices = @transform_10, window_bounds = array<i64: 16, 1>}]} {
    %c0 = arith.constant 0 : index
    %c0_0 = arith.constant 0 : index
    %0 = vector.load %arg1[%c0, %c0_0] : memref<16x155xf32, #tpu.memory_space<vmem>>, vector<16x155xf32>
    %1 = arith.truncf %0 : vector<16x155xf32> to vector<16x155xbf16>
    %c0_1 = arith.constant 0 : index
    %c0_2 = arith.constant 0 : index
    %2 = vector.load %arg2[%c0_1, %c0_2] : memref<155x128xbf16, #tpu.memory_space<vmem>>, vector<155x128xbf16>
    %cst = arith.constant dense<0.000000e+00> : vector<16x128xf32>
    %3 = tpu.matmul %1, %2, %cst {dimension_numbers = #tpu.dot_dimension_numbers<[1], [0], [0], [1], [0, 0, 1, 1], [], []>} : vector<16x155xbf16>, vector<155x128xbf16>, vector<16x128xf32> -> vector<16x128xf32>
    %c0_3 = arith.constant 0 : index
    %c0_4 = arith.constant 0 : index
    %4 = vector.load %arg3[%c0_3, %c0_4] : memref<1x128xf32, #tpu.memory_space<vmem>>, vector<1x128xf32>
    %5 = vector.broadcast %4 : vector<1x128xf32> to vector<16x128xf32>
    %6 = arith.addf %3, %5 : vector<16x128xf32>
    %cst_5 = arith.constant 0.000000e+00 : f32
    %7 = vector.broadcast %cst_5 : f32 to vector<16x128xf32>
    %8 = arith.subf %7, %6 : vector<16x128xf32>
    %9 = arith.truncf %8 : vector<16x128xf32> to vector<16x128xbf16>
    %10 = math.exp %9 : vector<16x128xbf16>
    %11 = arith.extf %10 : vector<16x128xbf16> to vector<16x128xf32>
    %cst_6 = arith.constant 1.000000e+00 : f32
    %12 = vector.broadcast %cst_6 : f32 to vector<16x128xf32>
    %13 = arith.addf %12, %11 : vector<16x128xf32>
    %14 = tpu.reciprocal %13 {approx = true} : vector<16x128xf32> -> vector<16x128xf32>
    %15 = arith.mulf %6, %14 : vector<16x128xf32>
    %16 = arith.truncf %15 : vector<16x128xf32> to vector<16x128xbf16>
    %c0_7 = arith.constant 0 : index
    %c0_8 = arith.constant 0 : index
    %17 = vector.load %arg4[%c0_7, %c0_8] : memref<128x64xbf16, #tpu.memory_space<vmem>>, vector<128x64xbf16>
    %cst_9 = arith.constant dense<0.000000e+00> : vector<16x64xf32>
    %18 = tpu.matmul %16, %17, %cst_9 {dimension_numbers = #tpu.dot_dimension_numbers<[1], [0], [0], [1], [0, 0, 1, 1], [], []>} : vector<16x128xbf16>, vector<128x64xbf16>, vector<16x64xf32> -> vector<16x64xf32>
    %c0_10 = arith.constant 0 : index
    %c0_11 = arith.constant 0 : index
    %19 = vector.load %arg5[%c0_10, %c0_11] : memref<1x64xf32, #tpu.memory_space<vmem>>, vector<1x64xf32>
    %20 = vector.broadcast %19 : vector<1x64xf32> to vector<16x64xf32>
    %21 = arith.addf %18, %20 : vector<16x64xf32>
    %cst_12 = arith.constant 0.000000e+00 : f32
    %22 = vector.broadcast %cst_12 : f32 to vector<16x64xf32>
    %23 = arith.subf %22, %21 : vector<16x64xf32>
    %24 = arith.truncf %23 : vector<16x64xf32> to vector<16x64xbf16>
    %25 = math.exp %24 : vector<16x64xbf16>
    %26 = arith.extf %25 : vector<16x64xbf16> to vector<16x64xf32>
    %cst_13 = arith.constant 1.000000e+00 : f32
    %27 = vector.broadcast %cst_13 : f32 to vector<16x64xf32>
    %28 = arith.addf %27, %26 : vector<16x64xf32>
    %29 = tpu.reciprocal %28 {approx = true} : vector<16x64xf32> -> vector<16x64xf32>
    %30 = arith.mulf %21, %29 : vector<16x64xf32>
    %31 = arith.truncf %30 : vector<16x64xf32> to vector<16x64xbf16>
    %c0_14 = arith.constant 0 : index
    %c0_15 = arith.constant 0 : index
    %32 = vector.load %arg6[%c0_14, %c0_15] : memref<64x32xbf16, #tpu.memory_space<vmem>>, vector<64x32xbf16>
    %cst_16 = arith.constant dense<0.000000e+00> : vector<16x32xf32>
    %33 = tpu.matmul %31, %32, %cst_16 {dimension_numbers = #tpu.dot_dimension_numbers<[1], [0], [0], [1], [0, 0, 1, 1], [], []>} : vector<16x64xbf16>, vector<64x32xbf16>, vector<16x32xf32> -> vector<16x32xf32>
    %c0_17 = arith.constant 0 : index
    %c0_18 = arith.constant 0 : index
    %34 = vector.load %arg7[%c0_17, %c0_18] : memref<1x32xf32, #tpu.memory_space<vmem>>, vector<1x32xf32>
    %35 = vector.broadcast %34 : vector<1x32xf32> to vector<16x32xf32>
    %36 = arith.addf %33, %35 : vector<16x32xf32>
    %cst_19 = arith.constant 0.000000e+00 : f32
    %37 = vector.broadcast %cst_19 : f32 to vector<16x32xf32>
    %38 = arith.subf %37, %36 : vector<16x32xf32>
    %39 = arith.truncf %38 : vector<16x32xf32> to vector<16x32xbf16>
    %40 = math.exp %39 : vector<16x32xbf16>
    %41 = arith.extf %40 : vector<16x32xbf16> to vector<16x32xf32>
    %cst_20 = arith.constant 1.000000e+00 : f32
    %42 = vector.broadcast %cst_20 : f32 to vector<16x32xf32>
    %43 = arith.addf %42, %41 : vector<16x32xf32>
    %44 = tpu.reciprocal %43 {approx = true} : vector<16x32xf32> -> vector<16x32xf32>
    %45 = arith.mulf %36, %44 : vector<16x32xf32>
    %46 = arith.truncf %45 : vector<16x32xf32> to vector<16x32xbf16>
    %c0_21 = arith.constant 0 : index
    %c0_22 = arith.constant 0 : index
    %47 = vector.load %arg10[%c0_21, %c0_22] : memref<16x32xbf16, #tpu.memory_space<vmem>>, vector<16x32xbf16>
    tpu.vector_store %arg10[%c0_21, %c0_22], %46 {strides = array<i32>} : memref<16x32xbf16, #tpu.memory_space<vmem>>, vector<16x32xbf16>,
    %c0_23 = arith.constant 0 : index
    %c0_24 = arith.constant 0 : index
    %48 = vector.load %arg8[%c0_23, %c0_24] : memref<1x32xf32, #tpu.memory_space<vmem>>, vector<1x32xf32>
    %49 = vector.broadcast %48 : vector<1x32xf32> to vector<16x32xf32>
    %50 = arith.mulf %45, %49 : vector<16x32xf32>
    %cst_25 = arith.constant dense<0.000000e+00> : vector<16xf32>
    %51 = vector.multi_reduction <add>, %50, %cst_25 [1] : vector<16x32xf32> to vector<16xf32>
    %52 = vector.shape_cast %51 : vector<16xf32> to vector<16x1xf32>
    %c0_26 = arith.constant 0 : index
    %c0_27 = arith.constant 0 : index
    %53 = vector.load %arg9[%c0_26, %c0_27] : memref<1x1xf32, #tpu.memory_space<vmem>>, vector<1x1xf32>
    %54 = vector.broadcast %53 : vector<1x1xf32> to vector<16x1xf32>
    %55 = arith.addf %52, %54 : vector<16x1xf32>
    %c0_28 = arith.constant 0 : index
    %c0_29 = arith.constant 0 : index
    %56 = vector.load %arg11[%c0_28, %c0_29] : memref<16x1xf32, #tpu.memory_space<vmem>>, vector<16x1xf32>
    tpu.vector_store %arg11[%c0_28, %c0_29], %55 {strides = array<i32>} : memref<16x1xf32, #tpu.memory_space<vmem>>, vector<16x1xf32>,
    return
  }
  func.func @transform_0(%arg0: i32) -> (i32, i32) {
    %c0_i32 = arith.constant 0 : i32
    %c0_i32_0 = arith.constant 0 : i32
    return %arg0, %c0_i32 : i32, i32
  }
  func.func @transform_1(%arg0: i32) -> (i32, i32) {
    %c0_i32 = arith.constant 0 : i32
    %c0_i32_0 = arith.constant 0 : i32
    %c0_i32_1 = arith.constant 0 : i32
    return %c0_i32, %c0_i32_0 : i32, i32
  }
  func.func @transform_2(%arg0: i32) -> (i32, i32) {
    %c0_i32 = arith.constant 0 : i32
    %c0_i32_0 = arith.constant 0 : i32
    %c0_i32_1 = arith.constant 0 : i32
    return %c0_i32, %c0_i32_0 : i32, i32
  }
  func.func @transform_3(%arg0: i32) -> (i32, i32) {
    %c0_i32 = arith.constant 0 : i32
    %c0_i32_0 = arith.constant 0 : i32
    %c0_i32_1 = arith.constant 0 : i32
    return %c0_i32, %c0_i32_0 : i32, i32
  }
  func.func @transform_4(%arg0: i32) -> (i32, i32) {
    %c0_i32 = arith.constant 0 : i32
    %c0_i32_0 = arith.constant 0 : i32
    %c0_i32_1 = arith.constant 0 : i32
    return %c0_i32, %c0_i32_0 : i32, i32
  }
  func.func @transform_5(%arg0: i32) -> (i32, i32) {
    %c0_i32 = arith.constant 0 : i32
    %c0_i32_0 = arith.constant 0 : i32
    %c0_i32_1 = arith.constant 0 : i32
    return %c0_i32, %c0_i32_0 : i32, i32
  }
  func.func @transform_6(%arg0: i32) -> (i32, i32) {
    %c0_i32 = arith.constant 0 : i32
    %c0_i32_0 = arith.constant 0 : i32
    %c0_i32_1 = arith.constant 0 : i32
    return %c0_i32, %c0_i32_0 : i32, i32
  }
  func.func @transform_7(%arg0: i32) -> (i32, i32) {
    %c0_i32 = arith.constant 0 : i32
    %c0_i32_0 = arith.constant 0 : i32
    %c0_i32_1 = arith.constant 0 : i32
    return %c0_i32, %c0_i32_0 : i32, i32
  }
  func.func @transform_8(%arg0: i32) -> (i32, i32) {
    %c0_i32 = arith.constant 0 : i32
    %c0_i32_0 = arith.constant 0 : i32
    %c0_i32_1 = arith.constant 0 : i32
    return %c0_i32, %c0_i32_0 : i32, i32
  }
  func.func @transform_9(%arg0: i32) -> (i32, i32) {
    %c0_i32 = arith.constant 0 : i32
    %c0_i32_0 = arith.constant 0 : i32
    return %arg0, %c0_i32 : i32, i32
  }
  func.func @transform_10(%arg0: i32) -> (i32, i32) {
    %c0_i32 = arith.constant 0 : i32
    %c0_i32_0 = arith.constant 0 : i32
    return %arg0, %c0_i32 : i32, i32
  }
}

module attributes {stable_mosaic.version = 11 : i64} {
  func.func @pathnet_panu_kernel(%arg0: i32, %arg1: memref<16x155xf32, #tpu.memory_space<vmem>>, %arg2: memref<155x128xbf16, #tpu.memory_space<vmem>>, %arg3: memref<1x128xf32, #tpu.memory_space<vmem>>, %arg4: memref<128x64xbf16, #tpu.memory_space<vmem>>, %arg5: memref<1x64xf32, #tpu.memory_space<vmem>>, %arg6: memref<64x32xbf16, #tpu.memory_space<vmem>>, %arg7: memref<1x32xf32, #tpu.memory_space<vmem>>, %arg8: memref<1x32xf32, #tpu.memory_space<vmem>>, %arg9: memref<1x1xf32, #tpu.memory_space<vmem>>, %arg10: memref<16x32xbf16, #tpu.memory_space<vmem>>, %arg11: memref<16x1xf32, #tpu.memory_space<vmem>>) attributes {dimension_semantics = [#tpu.dimension_semantics<parallel>], iteration_bounds = array<i64: 2>, scalar_prefetch = 0 : i64, scratch_operands = 0 : i64, tpu.core_type = #tpu.core_type<tc>, window_params = [{transform_indices = @transform_0, window_bounds = array<i64: 16, 155>}, {pipeline_mode = #tpu.pipeline_mode<synchronous>, transform_indices = @transform_1, window_bounds = array<i64: 155, 128>}, {pipeline_mode = #tpu.pipeline_mode<synchronous>, transform_indices = @transform_2, window_bounds = array<i64: 1, 128>}, {pipeline_mode = #tpu.pipeline_mode<synchronous>, transform_indices = @transform_3, window_bounds = array<i64: 128, 64>}, {pipeline_mode = #tpu.pipeline_mode<synchronous>, transform_indices = @transform_4, window_bounds = array<i64: 1, 64>}, {pipeline_mode = #tpu.pipeline_mode<synchronous>, transform_indices = @transform_5, window_bounds = array<i64: 64, 32>}, {pipeline_mode = #tpu.pipeline_mode<synchronous>, transform_indices = @transform_6, window_bounds = array<i64: 1, 32>}, {pipeline_mode = #tpu.pipeline_mode<synchronous>, transform_indices = @transform_7, window_bounds = array<i64: 1, 32>}, {pipeline_mode = #tpu.pipeline_mode<synchronous>, transform_indices = @transform_8, window_bounds = array<i64: 1, 1>}, {transform_indices = @transform_9, window_bounds = array<i64: 16, 32>}, {transform_indices = @transform_10, window_bounds = array<i64: 16, 1>}]} {
    %c0 = arith.constant 0 : index
    %c0_0 = arith.constant 0 : index
    %0 = vector.load %arg1[%c0, %c0_0] : memref<16x155xf32, #tpu.memory_space<vmem>>, vector<16x155xf32>
    %1 = arith.truncf %0 : vector<16x155xf32> to vector<16x155xbf16>
    %c0_1 = arith.constant 0 : index
    %c0_2 = arith.constant 0 : index
    %2 = vector.load %arg2[%c0_1, %c0_2] : memref<155x128xbf16, #tpu.memory_space<vmem>>, vector<155x128xbf16>
    %cst = arith.constant dense<0.000000e+00> : vector<16x128xf32>
    %3 = tpu.matmul %1, %2, %cst {dimension_numbers = #tpu.dot_dimension_numbers<[1], [0], [0], [1], [0, 0, 1, 1], [], []>} : vector<16x155xbf16>, vector<155x128xbf16>, vector<16x128xf32> -> vector<16x128xf32>
    %c0_3 = arith.constant 0 : index
    %c0_4 = arith.constant 0 : index
    %4 = vector.load %arg3[%c0_3, %c0_4] : memref<1x128xf32, #tpu.memory_space<vmem>>, vector<1x128xf32>
    %5 = vector.broadcast %4 : vector<1x128xf32> to vector<16x128xf32>
    %6 = arith.addf %3, %5 : vector<16x128xf32>
    %cst_5 = arith.constant 0.000000e+00 : f32
    %7 = vector.broadcast %cst_5 : f32 to vector<16x128xf32>
    %8 = arith.subf %7, %6 : vector<16x128xf32>
    %9 = arith.truncf %8 : vector<16x128xf32> to vector<16x128xbf16>
    %10 = math.exp %9 : vector<16x128xbf16>
    %11 = arith.extf %10 : vector<16x128xbf16> to vector<16x128xf32>
    %cst_6 = arith.constant 1.000000e+00 : f32
    %12 = vector.broadcast %cst_6 : f32 to vector<16x128xf32>
    %13 = arith.addf %12, %11 : vector<16x128xf32>
    %14 = tpu.reciprocal %13 {approx = true} : vector<16x128xf32> -> vector<16x128xf32>
    %15 = arith.mulf %6, %14 : vector<16x128xf32>
    %16 = arith.truncf %15 : vector<16x128xf32> to vector<16x128xbf16>
    %c0_7 = arith.constant 0 : index
    %c0_8 = arith.constant 0 : index
    %17 = vector.load %arg4[%c0_7, %c0_8] : memref<128x64xbf16, #tpu.memory_space<vmem>>, vector<128x64xbf16>
    %cst_9 = arith.constant dense<0.000000e+00> : vector<16x64xf32>
    %18 = tpu.matmul %16, %17, %cst_9 {dimension_numbers = #tpu.dot_dimension_numbers<[1], [0], [0], [1], [0, 0, 1, 1], [], []>} : vector<16x128xbf16>, vector<128x64xbf16>, vector<16x64xf32> -> vector<16x64xf32>
    %c0_10 = arith.constant 0 : index
    %c0_11 = arith.constant 0 : index
    %19 = vector.load %arg5[%c0_10, %c0_11] : memref<1x64xf32, #tpu.memory_space<vmem>>, vector<1x64xf32>
    %20 = vector.broadcast %19 : vector<1x64xf32> to vector<16x64xf32>
    %21 = arith.addf %18, %20 : vector<16x64xf32>
    %cst_12 = arith.constant 0.000000e+00 : f32
    %22 = vector.broadcast %cst_12 : f32 to vector<16x64xf32>
    %23 = arith.subf %22, %21 : vector<16x64xf32>
    %24 = arith.truncf %23 : vector<16x64xf32> to vector<16x64xbf16>
    %25 = math.exp %24 : vector<16x64xbf16>
    %26 = arith.extf %25 : vector<16x64xbf16> to vector<16x64xf32>
    %cst_13 = arith.constant 1.000000e+00 : f32
    %27 = vector.broadcast %cst_13 : f32 to vector<16x64xf32>
    %28 = arith.addf %27, %26 : vector<16x64xf32>
    %29 = tpu.reciprocal %28 {approx = true} : vector<16x64xf32> -> vector<16x64xf32>
    %30 = arith.mulf %21, %29 : vector<16x64xf32>
    %31 = arith.truncf %30 : vector<16x64xf32> to vector<16x64xbf16>
    %c0_14 = arith.constant 0 : index
    %c0_15 = arith.constant 0 : index
    %32 = vector.load %arg6[%c0_14, %c0_15] : memref<64x32xbf16, #tpu.memory_space<vmem>>, vector<64x32xbf16>
    %cst_16 = arith.constant dense<0.000000e+00> : vector<16x32xf32>
    %33 = tpu.matmul %31, %32, %cst_16 {dimension_numbers = #tpu.dot_dimension_numbers<[1], [0], [0], [1], [0, 0, 1, 1], [], []>} : vector<16x64xbf16>, vector<64x32xbf16>, vector<16x32xf32> -> vector<16x32xf32>
    %c0_17 = arith.constant 0 : index
    %c0_18 = arith.constant 0 : index
    %34 = vector.load %arg7[%c0_17, %c0_18] : memref<1x32xf32, #tpu.memory_space<vmem>>, vector<1x32xf32>
    %35 = vector.broadcast %34 : vector<1x32xf32> to vector<16x32xf32>
    %36 = arith.addf %33, %35 : vector<16x32xf32>
    %cst_19 = arith.constant 0.000000e+00 : f32
    %37 = vector.broadcast %cst_19 : f32 to vector<16x32xf32>
    %38 = arith.subf %37, %36 : vector<16x32xf32>
    %39 = arith.truncf %38 : vector<16x32xf32> to vector<16x32xbf16>
    %40 = math.exp %39 : vector<16x32xbf16>
    %41 = arith.extf %40 : vector<16x32xbf16> to vector<16x32xf32>
    %cst_20 = arith.constant 1.000000e+00 : f32
    %42 = vector.broadcast %cst_20 : f32 to vector<16x32xf32>
    %43 = arith.addf %42, %41 : vector<16x32xf32>
    %44 = tpu.reciprocal %43 {approx = true} : vector<16x32xf32> -> vector<16x32xf32>
    %45 = arith.mulf %36, %44 : vector<16x32xf32>
    %46 = arith.truncf %45 : vector<16x32xf32> to vector<16x32xbf16>
    %c0_21 = arith.constant 0 : index
    %c0_22 = arith.constant 0 : index
    %47 = vector.load %arg10[%c0_21, %c0_22] : memref<16x32xbf16, #tpu.memory_space<vmem>>, vector<16x32xbf16>
    tpu.vector_store %arg10[%c0_21, %c0_22], %46 {strides = array<i32>} : memref<16x32xbf16, #tpu.memory_space<vmem>>, vector<16x32xbf16>,
    %c0_23 = arith.constant 0 : index
    %c0_24 = arith.constant 0 : index
    %48 = vector.load %arg8[%c0_23, %c0_24] : memref<1x32xf32, #tpu.memory_space<vmem>>, vector<1x32xf32>
    %49 = vector.broadcast %48 : vector<1x32xf32> to vector<16x32xf32>
    %50 = arith.mulf %45, %49 : vector<16x32xf32>
    %cst_25 = arith.constant dense<0.000000e+00> : vector<16xf32>
    %51 = vector.multi_reduction <add>, %50, %cst_25 [1] : vector<16x32xf32> to vector<16xf32>
    %52 = vector.shape_cast %51 : vector<16xf32> to vector<16x1xf32>
    %c0_26 = arith.constant 0 : index
    %c0_27 = arith.constant 0 : index
    %53 = vector.load %arg9[%c0_26, %c0_27] : memref<1x1xf32, #tpu.memory_space<vmem>>, vector<1x1xf32>
    %54 = vector.broadcast %53 : vector<1x1xf32> to vector<16x1xf32>
    %55 = arith.addf %52, %54 : vector<16x1xf32>
    %c0_28 = arith.constant 0 : index
    %c0_29 = arith.constant 0 : index
    %56 = vector.load %arg11[%c0_28, %c0_29] : memref<16x1xf32, #tpu.memory_space<vmem>>, vector<16x1xf32>
    tpu.vector_store %arg11[%c0_28, %c0_29], %55 {strides = array<i32>} : memref<16x1xf32, #tpu.memory_space<vmem>>, vector<16x1xf32>,
    return
  }
  func.func @transform_0(%arg0: i32) -> (i32, i32) {
    %c0_i32 = arith.constant 0 : i32
    %c0_i32_0 = arith.constant 0 : i32
    return %arg0, %c0_i32 : i32, i32
  }
  func.func @transform_1(%arg0: i32) -> (i32, i32) {
    %c0_i32 = arith.constant 0 : i32
    %c0_i32_0 = arith.constant 0 : i32
    %c0_i32_1 = arith.constant 0 : i32
    return %c0_i32, %c0_i32_0 : i32, i32
  }
  func.func @transform_2(%arg0: i32) -> (i32, i32) {
    %c0_i32 = arith.constant 0 : i32
    %c0_i32_0 = arith.constant 0 : i32
    %c0_i32_1 = arith.constant 0 : i32
    return %c0_i32, %c0_i32_0 : i32, i32
  }
  func.func @transform_3(%arg0: i32) -> (i32, i32) {
    %c0_i32 = arith.constant 0 : i32
    %c0_i32_0 = arith.constant 0 : i32
    %c0_i32_1 = arith.constant 0 : i32
    return %c0_i32, %c0_i32_0 : i32, i32
  }
  func.func @transform_4(%arg0: i32) -> (i32, i32) {
    %c0_i32 = arith.constant 0 : i32
    %c0_i32_0 = arith.constant 0 : i32
    %c0_i32_1 = arith.constant 0 : i32
    return %c0_i32, %c0_i32_0 : i32, i32
  }
  func.func @transform_5(%arg0: i32) -> (i32, i32) {
    %c0_i32 = arith.constant 0 : i32
    %c0_i32_0 = arith.constant 0 : i32
    %c0_i32_1 = arith.constant 0 : i32
    return %c0_i32, %c0_i32_0 : i32, i32
  }
  func.func @transform_6(%arg0: i32) -> (i32, i32) {
    %c0_i32 = arith.constant 0 : i32
    %c0_i32_0 = arith.constant 0 : i32
    %c0_i32_1 = arith.constant 0 : i32
    return %c0_i32, %c0_i32_0 : i32, i32
  }
  func.func @transform_7(%arg0: i32) -> (i32, i32) {
    %c0_i32 = arith.constant 0 : i32
    %c0_i32_0 = arith.constant 0 : i32
    %c0_i32_1 = arith.constant 0 : i32
    return %c0_i32, %c0_i32_0 : i32, i32
  }
  func.func @transform_8(%arg0: i32) -> (i32, i32) {
    %c0_i32 = arith.constant 0 : i32
    %c0_i32_0 = arith.constant 0 : i32
    %c0_i32_1 = arith.constant 0 : i32
    return %c0_i32, %c0_i32_0 : i32, i32
  }
  func.func @transform_9(%arg0: i32) -> (i32, i32) {
    %c0_i32 = arith.constant 0 : i32
    %c0_i32_0 = arith.constant 0 : i32
    return %arg0, %c0_i32 : i32, i32
  }
  func.func @transform_10(%arg0: i32) -> (i32, i32) {
    %c0_i32 = arith.constant 0 : i32
    %c0_i32_0 = arith.constant 0 : i32
    return %arg0, %c0_i32 : i32, i32
  }
}

</mosaic_0001>

<bundles_post_ra>
// kernel: tpu_custom_call.1
= control target key start
LH: loop header
LB: loop body
LE: loop exit
PB: predicated region body
PF: predicated region fallthrough
CT: control target
= control target key end

     0   :  { %s1807_s0 = inlined_call_operand.vmem [shape: f32[22,155], index: 0, kind: input, shape index: {}]   ;;  %s1808_s1 = inlined_call_operand.vmem [shape: bf16[155,128], index: 1, kind: input, shape index: {}]   ;;  %s1809_s2 = inlined_call_operand.vmem [shape: f32[1,128], index: 2, kind: input, shape index: {}]   ;;  %s1810_s3 = inlined_call_operand.vmem [shape: bf16[128,64], index: 3, kind: input, shape index: {}]   ;;  %s1811_s4 = inlined_call_operand.vmem [shape: f32[1,64], index: 4, kind: input, shape index: {}]   ;;  %s1812_s5 = inlined_call_operand.vmem [shape: bf16[64,32], index: 5, kind: input, shape index: {}]   ;;  %s1813_s6 = inlined_call_operand.vmem [shape: f32[1,32], index: 6, kind: input, shape index: {}]   ;;  %s1814_s7 = inlined_call_operand.vmem [shape: f32[1,32], index: 7, kind: input, shape index: {}]   ;;  %s1815_s8 = inlined_call_operand.<no memory space> [shape: f32[1,1], index: 8, kind: input, shape index: {}]   ;;  %s1816_s9 = inlined_call_operand.hbm [shape: bf16[22,32], index: 9, kind: output, shape index: {0}]   ;;  %s1817_s10 = inlined_call_operand.vmem [shape: f32[22,1], index: 10, kind: output, shape index: {1}]  }
   0x1   :  { %1819 = sst [smem:[#allocation7_spill]] %s1807_s0  ;;  %v16_v0 = vstv %s1815_s8 }
   0x2   :  { %1820 = sst [smem:[#allocation8_spill]] %s1808_s1  ;;  %17 = vst [vmem:[#allocation2] sm:$0x1] %v16_v0 }
   0x3   :  { %1821 = sst [smem:[#allocation9_spill]] %s1809_s2 }
   0x4   :  { %18 = vsyncpa [#allocation4], 0 }
   0x5   :  { %20 = vsyncpa [#allocation4 + $0x1], 0  ;;  %s1566_s15 = smov 0   ;;  %s1568_s16 = smov 0  }
   0x6   :  { %s1570_s17 = smov 0   ;;  %s1572_s18 = smov 0  }
   0x7 LB: > { %s1587_s8 = sadd.s32 4294967295, %s1467_s18   ;;  %s1110_s19 = sadd.s32 4294967294, %s1467_s18   ;;  %s1467_s18 = sphi %s1572_s18, %s1831_s18   ;;  %s1463_s17 = sphi %s1570_s17, %s1830_s17   ;;  %s1459_s16 = sphi %s1568_s16, %s1829_s16   ;;  %s1455_s15 = sphi %s1566_s15, %s1828_s15  }
   0x8   : > { %s1591_s20 = sadd.s32 1, %s1467_s18   ;;  %s227_s21 = sadd.s32 1, %s1463_s17 }
   0x9   : > { %s224_s22 = ssub.s32 %s1467_s18, %s1591_s20  ;;  %p237_p0 = scmp.ne.s32.totalorder %s1463_s17, %s1459_s16 }
   0xa   : > { %p225_p1 = scmp.eq.s32.totalorder %s224_s22, 0  ;;  %p238_p2 = scmp.eq.s32.totalorder %s1587_s8, 1 }
   0xb   : > { %p243_p3 = scmp.ne.s32.totalorder %s1459_s16, %s1455_s15  ;;  %p244_p4 = scmp.eq.s32.totalorder %s1110_s19, 1 }
   0xc   : > { %s1602_s23 = scalar_select %p225_p1, %s1463_s17, %s227_s21  }
   0xd   : > { %p1604_p5 = por %p238_p2, %p237_p0  ;;  %p1608_p6 = por %p244_p4, %p243_p3 }
   0xe   : > { %p1113_p7 = scmp.ge.s32.totalorder %s1467_s18, 1  ;;  %p332_p8 = scmp.lt.s32.totalorder %s1467_s18, 3 }
  0x10   : > { %p333_p9 = pnand %p1113_p7, %p332_p8 }
  0x11   : > { %s1824_s1 = sld [smem:[#allocation8_spill]] (!%p333_p9)  ;;  %s1624_s12 = sshll.u32 (!%p333_p9), %s1587_s8, 1 }
  0x12   : > { %336 = sbr.rel (%p333_p9) target bundleno = 1011 (0x3f3), region = 56  ;;  %p386_p10 = scmp.lt.s32.totalorder (!%p333_p9), %s1624_s12, 2 }
  0x13   : > { %s1825_s0 = sld [smem:[#allocation7_spill]] (!%p333_p9) }
  0x14   : > { %s1826_s2 = sld [smem:[#allocation9_spill]] (!%p333_p9) }
  0x17   : > { %v1335_v1 = vld [vmem:[%s1824_s1 + $0x38] sm:$0xff]   ;;  %v1501_v2 = vmov 0   ;;  %v1336_v3 = vld [vmem:[%s1824_s1 + $0x30] sm:$0xff]   ;;  %v1337_v4 = vld [vmem:[%s1824_s1 + $0x28] sm:$0xff]   ;;  %s387_s13 = scalar_select %p386_p10, %s1624_s12, 2  ;;  %vm500_vm0 = vcmask 220160  }
  0x18   : > { %511 = vmatprep.subr.bf16.mxu0 %v1501_v2  ;;  %v1338_v5 = vld [vmem:[%s1824_s1 + $0x20] sm:$0xff]   ;;  %v1339_v8 = vld [vmem:[%s1824_s1 + $0x18] sm:$0xff]   ;;  %v1340_v10 = vld [vmem:[%s1824_s1 + $0x10] sm:$0xff]   ;;  %vm504_vm1 = vcmask 1044480   ;;  %vm505_vm2 = vcmask 1045504   ;;  %v1502_v12 = vmov 65535  }
  0x19   : > { %512 = vmatpush1.bf16.msra.mxu0 %v1335_v1  ;;  %s1174_s21 = sshll.u32 %s387_s13, 4  ;;  %v1341_v11 = vld [vmem:[%s1824_s1 + $0x8] sm:$0xff]   ;;  %v506_v13 = vsel %vm504_vm1, 4294967295, %v1502_v12  ;;  %v1342_v14 = vld [vmem:[%s1824_s1] sm:$0xff]   ;;  %v1345_v22 = vld [vmem:[%s1810_s3 + $0x38] sm:$0xff]   ;;  %v1503_v23 = vmov 0.0  }
  0x1a   : > { %513 = vmatprep.subr.bf16.mxu0 %v1501_v2  ;;  %s390_s27 = scalar_lea.vmem %s1825_s0, %s1174_s21  ;;  %v1343_v15 = vld [vmem:[%s1824_s1 + $0x48] sm:$0x3f]   ;;  %v507_v16 = vsel %vm505_vm2, %v506_v13, 0  ;;  %v1344_v18 = vld [vmem:[%s1824_s1 + $0x40] sm:$0xff]   ;;  %1195 = vmatprep.subr.bf16.mxu1 %v1503_v23  ;;  %v1346_v24 = vld [vmem:[%s1810_s3 + $0x30] sm:$0xff]   ;;  %vm1504_vm3 = vmmov 0  }
  0x1b   : > { %v409_v6 = vld [vmem:[%s390_s27 + $0x8] sm:$0xff]  ;;  %v411_v7 = vld [vmem:[%s390_s27 + $0x18] sm:$0xff]  ;;  %v509_v17 = vand.u32 %v1343_v15, %v507_v16  ;;  %v408_v19 = vld [vmem:[%s390_s27] sm:$0xff]  ;;  %1196 = vmatpush3.bf16.msra.mxu1 %v1345_v22  ;;  %1211 = vmatprep.mubr.msk.bf16.mxu1 %vm1504_vm3, %v1503_v23  ;;  %vm733_vm4 = vcmask 523264   ;;  %s1697_s21 = sand.u32 1, %s1459_s16   ;;  %vm800_vm5 = vcmask 257024  }
  0x1c   : > { %v413_v9 = vpack.c.bf16 %v411_v7, %v409_v6  ;;  %v410_v20 = vld [vmem:[%s390_s27 + $0x10] sm:$0xff]  ;;  %1197 = vmatprep.subr.bf16.mxu1 %v1503_v23  ;;  %v1347_v25 = vld [vmem:[%s1810_s3 + $0x28] sm:$0xff]   ;;  %v1348_v26 = vld [vmem:[%s1810_s3 + $0x20] sm:$0xff]   ;;  %s1114_s28 = sshll.u32 %s1697_s21, 3  ;;  %vm812_vm6 = vcmask 261120   ;;  %s1115_s13 = sshll.u32 %s1697_s21, 4 }
  0x1d   : > { %514 = vmatpush1.bf16.msra.mxu0 %v1336_v3  ;;  %v412_v21 = vpack.c.bf16 %v410_v20, %v408_v19  ;;  %v1349_v27 = vld [vmem:[%s1810_s3 + $0x18] sm:$0xff]   ;;  %v1350_v28 = vld [vmem:[%s1810_s3 + $0x10] sm:$0xff]   ;;  %v1351_v29 = vld [vmem:[%s1810_s3 + $0x8] sm:$0xff]   ;;  %s1706_s11 = scalar_lea.vmem [#allocation3], %s1114_s28  ;;  %vm828_vm7 = vcmask 7168   ;;  %s1711_s14 = scalar_lea.vmem [#allocation5], %s1115_s13  }
  0x1e   : > { %515 = vmatprep.subr.bf16.mxu0 %v1501_v2  ;;  %1130 = vmatprep.mubr.msk.bf16.mxu0 %vm500_vm0, %v413_v9  ;;  %v1352_v30 = vld [vmem:[%s1810_s3] sm:$0xff]   ;;  %v1353_v52 = vld [vmem:[%s1812_s5 + $0x18] sm:$0xff]   ;;  %v1354_v53 = vld [vmem:[%s1812_s5 + $0x10] sm:$0xff]   ;;  %s1818_s19 = scalar_lea.sflag [#allocation4], %s1697_s21  ;;  %s844_s27 = ssub.s32 (%p1604_p5), 3, %s1624_s12 }
  0x1f   : > { %1198 = vmatpush3.bf16.msra.mxu1 %v1346_v24  ;;  %v1119_v31 = vld [vmem:[%s1826_s2] ss:$0 sm:$0xff]  ;;  %v1355_v54 = vld [vmem:[%s1812_s5 + $0x8] sm:$0xff]   ;;  %p845_p11 = scmp.lt.s32.totalorder (%p1604_p5), %s844_s27, 2 }
  0x20   : > { %1199 = vmatprep.subr.bf16.mxu1 %v1503_v23  ;;  %v1356_v55 = vld [vmem:[%s1812_s5] sm:$0xff]  }
  0x21   : > { %516 = vmatpush1.bf16.msra.mxu0 %v1337_v4  ;;  %v1131_v56 = vld [vmem:[%s1811_s4] ss:$0 sm:$0xff] }
  0x22   : > { %517 = vmatprep.subr.bf16.mxu0 %v1501_v2  ;;  %v1140_v13 = vld [vmem:[%s1813_s6] ss:$0 sm:$0xff] }
  0x23   : > { %1200 = vmatpush3.bf16.msra.mxu1 %v1347_v25 }
  0x24   : > { %1201 = vmatprep.subr.bf16.mxu1 %v1503_v23 }
  0x25   : > { %518 = vmatpush1.bf16.msra.mxu0 %v1338_v5 }
  0x26   : > { %519 = vmatprep.subr.bf16.mxu0 %v1501_v2 }
  0x27   : > { %1202 = vmatpush3.bf16.msra.mxu1 %v1348_v26 }
  0x28   : > { %1203 = vmatprep.subr.bf16.mxu1 %v1503_v23 }
  0x29   : > { %520 = vmatpush1.bf16.msra.mxu0 %v1339_v8 }
  0x2a   : > { %521 = vmatprep.subr.bf16.mxu0 %v1501_v2 }
  0x2b   : > { %1204 = vmatpush3.bf16.msra.mxu1 %v1349_v27 }
  0x2c   : > { %1205 = vmatprep.subr.bf16.mxu1 %v1503_v23 }
  0x2d   : > { %522 = vmatpush1.bf16.msra.mxu0 %v1340_v10 }
  0x2e   : > { %523 = vmatprep.subr.bf16.mxu0 %v1501_v2 }
  0x2f   : > { %1206 = vmatpush3.bf16.msra.mxu1 %v1350_v28 }
  0x30   : > { %1207 = vmatprep.subr.bf16.mxu1 %v1503_v23 }
  0x31   : > { %524 = vmatpush1.bf16.msra.mxu0 %v1341_v11 }
  0x32   : > { %525 = vmatprep.subr.bf16.mxu0 %v1501_v2 }
  0x33   : > { %1208 = vmatpush3.bf16.msra.mxu1 %v1351_v29 }
  0x34   : > { %1209 = vmatprep.subr.bf16.mxu1 %v1503_v23 }
  0x35   : > { %526 = vmatpush1.bf16.msra.mxu0 %v1342_v14 }
  0x36   : > { %539 = vmatprep.subr.bf16.mxu0 %v1501_v2 }
  0x37   : > { %1210 = vmatpush3.bf16.msra.mxu1 %v1352_v30 }
  0x38   : > { %1215 = vmatprep.subr.bf16.mxu1 %v1503_v23 }
  0x39   : > { %540 = vmatpush2.bf16.msra.mxu0 %v509_v17 }
  0x3a   : > { %541 = vmatprep.subr.bf16.mxu0 %v1501_v2 }
  0x3d   : > { %542 = vmatpush2.bf16.msra.mxu0 %v1344_v18 }
  0x40   : > { %544 = vmatmul.mubr.bf16.vlgmr.msra.gmra.mxu0 %v412_v21 }
 0x100   : > { %v545_v32 = vpop.f32.mrf.mxu0 }
 0x101   : > { %v546_v34 = vadd.f32 %v1119_v31, %v545_v32  ;;  %v1148_v32 = vld [vmem:[%s1814_s7] ss:$0 sm:$0xff] }
 0x102   : > { %v547_v33 = vpop.f32.mrf.mxu0 }
 0x103   : > { %v552_v38 = vsub.f32 0.0, %v546_v34 }
 0x104   : > { %v548_v35 = vpop.f32.mrf.mxu0 }
 0x105   : > { %v549_v36 = vadd.f32 %v1119_v31, %v548_v35 }
 0x106   : > { %v550_v37 = vpop.f32.mrf.mxu0 }
 0x107   : > { %v553_v39 = vsub.f32 0.0, %v549_v36 }
 0x109   : > { %v554_v40 = vpack.c.bf16 %v553_v39, %v552_v38 }
 0x10b   : > { %v556_v41 = vmul.bf16 1069105081, %v554_v40  ;;  %v1149_v40 = vld [vmem:[#allocation2] ss:$0 sm:$0xff] }
 0x10d   : > { %1357 = vpow.bf16 %v556_v41 }
 0x11b   : > { %v1358_v42 = vpop.eup %1357 }
 0x11c   : > { %v558_v43 = vunpack.c.l.bf16 %v1358_v42  ;;  %v559_v44 = vunpack.c.h.bf16 %v1358_v42 }
 0x11e   : > { %v561_v45 = vadd.f32 1.0, %v559_v44  ;;  %v560_v46 = vadd.f32 1.0, %v558_v43 }
 0x120   : > { %1359 = vrcp.f32 %v561_v45 }
 0x121   : > { %1361 = vrcp.f32 %v560_v46 }
 0x12d   : > { %v1360_v47 = vpop.eup %1359 }
 0x12e   : > { %v1362_v48 = vpop.eup %1361  ;;  %v565_v49 = vmul.f32 %v1360_v47, %v549_v36 }
 0x12f   : > { %v564_v50 = vmul.f32 %v1362_v48, %v546_v34 }
 0x131   : > { %v566_v51 = vpack.c.bf16 %v565_v49, %v564_v50 }
 0x133   : > { %1212 = vmatmul.mubr.bf16.vlgmr.msra.gmra.mxu1 %v566_v51 }
 0x134   : > { %1223 = vmatprep.mubr.msk.bf16.mxu1 %vm1504_vm3, %v1503_v23  ;;  %1216 = vmatpush3.bf16.msra.mxu1 %v1353_v52 }
 0x135   : > { %1217 = vmatprep.subr.bf16.mxu1 %v1503_v23 }
 0x138   : > { %1218 = vmatpush3.bf16.msra.mxu1 %v1354_v53 }
 0x139   : > { %1219 = vmatprep.subr.bf16.mxu1 %v1503_v23 }
 0x13c   : > { %1220 = vmatpush3.bf16.msra.mxu1 %v1355_v54 }
 0x13d   : > { %1221 = vmatprep.subr.bf16.mxu1 %v1503_v23 }
 0x140   : > { %1222 = vmatpush3.bf16.msra.mxu1 %v1356_v55 }
 0x1f3   : > { %v672_v57 = vpop.f32.mrf.mxu1 }
 0x1f4   : > { %v673_v59 = vadd.f32 %v1131_v56, %v672_v57 }
 0x1f5   : > { %v1213_v58 = vpop.f32.mrf.mxu1 }
 0x1f6   : > { %v679_v63 = vsub.f32 0.0, %v673_v59 }
 0x1f7   : > { %v675_v60 = vpop.f32.mrf.mxu1 }
 0x1f8   : > { %v676_v61 = vadd.f32 %v1131_v56, %v675_v60 }
 0x1f9   : > { %v1214_v62 = vpop.f32.mrf.mxu1 }
 0x1fa   : > { %v680_v0 = vsub.f32 0.0, %v676_v61 }
 0x1fc   : > { %v681_v1 = vpack.c.bf16 %v680_v0, %v679_v63 }
 0x1fe   : > { %v683_v2 = vmul.bf16 1069105081, %v681_v1 }
 0x200   : > { %1363 = vpow.bf16 %v683_v2 }
 0x20e   : > { %v1364_v3 = vpop.eup %1363 }
 0x20f   : > { %v685_v4 = vunpack.c.l.bf16 %v1364_v3  ;;  %v686_v5 = vunpack.c.h.bf16 %v1364_v3 }
 0x211   : > { %v687_v6 = vadd.f32 1.0, %v685_v4  ;;  %v688_v7 = vadd.f32 1.0, %v686_v5 }
 0x213   : > { %1365 = vrcp.f32 %v687_v6 }
 0x214   : > { %1367 = vrcp.f32 %v688_v7 }
 0x220   : > { %v1366_v8 = vpop.eup %1365 }
 0x221   : > { %v1368_v9 = vpop.eup %1367  ;;  %v691_v10 = vmul.f32 %v1366_v8, %v673_v59 }
 0x222   : > { %v692_v11 = vmul.f32 %v1368_v9, %v676_v61 }
 0x224   : > { %v693_v12 = vpack.c.bf16 %v692_v11, %v691_v10 }
 0x226   : > { %1224 = vmatmul.mubr.msk.bf16.vlgmr.msra.gmra.mxu1 %vm733_vm4, %v693_v12 }
 0x2e6   : > { %v771_v14 = vpop.f32.mrf.mxu1 }
 0x2e7   : > { %v772_v16 = vadd.f32 %v1140_v13, %v771_v14 }
 0x2e8   : > { %v1225_v15 = vpop.f32.mrf.mxu1 }
 0x2e9   : > { %v778_v20 = vsub.f32 0.0, %v772_v16 }
 0x2ea   : > { %v774_v17 = vpop.f32.mrf.mxu1 }
 0x2eb   : > { %v775_v18 = vadd.f32 %v1140_v13, %v774_v17 }
 0x2ec   : > { %v1226_v19 = vpop.f32.mrf.mxu1 }
 0x2ed   : > { %v779_v21 = vsub.f32 0.0, %v775_v18 }
 0x2ef   : > { %v780_v22 = vpack.c.bf16 %v779_v21, %v778_v20 }
 0x2f1   : > { %v782_v23 = vmul.bf16 1069105081, %v780_v22 }
 0x2f3   : > { %1369 = vpow.bf16 %v782_v23 }
 0x301   : > { %v1370_v24 = vpop.eup %1369 }
 0x302   : > { %v785_v25 = vunpack.c.h.bf16 %v1370_v24  ;;  %v784_v26 = vunpack.c.l.bf16 %v1370_v24 }
 0x304   : > { %v787_v27 = vadd.f32 1.0, %v785_v25  ;;  %v786_v28 = vadd.f32 1.0, %v784_v26 }
 0x306   : > { %1371 = vrcp.f32 %v787_v27 }
 0x307   : > { %1373 = vrcp.f32 %v786_v28 }
 0x313   : > { %v1372_v29 = vpop.eup %1371 }
 0x314   : > { %v1374_v30 = vpop.eup %1373  ;;  %v791_v31 = vmul.f32 %v1372_v29, %v775_v18 }
 0x315   : > { %v790_v33 = vmul.f32 %v1374_v30, %v772_v16 }
 0x316   : > { %v1176_v34 = vpack.c.bf16 %v791_v31, %v791_v31  ;;  %v811_v38 = vmul.f32 %v1148_v32, %v791_v31 }
 0x317   : > { %v810_v35 = vmul.f32 %v1148_v32, %v790_v33  ;;  %v1175_v36 = vpack.c.bf16 %v790_v33, %v790_v33 }
 0x318   : > { %802 = vst.msk [vmem:[%s1706_s11 + $0x4] sm:$0xf] %vm800_vm5, %v1176_v34  ;;  %v816_v39 = vsel %vm812_vm6, %v811_v38, 0.0 }
 0x319   : > { %v813_v37 = vsel %vm812_vm6, %v810_v35, 0.0  ;;  %801 = vst.msk [vmem:[%s1706_s11] sm:$0xf] %vm800_vm5, %v1175_v36 }
 0x31a   : > { %814 = vadd.xlane.f32.xlu0 %v813_v37 }
 0x31e   : > { %817 = vadd.xlane.f32.xlu0 %v816_v39 }
 0x3a3   : > { %v815_v41 = vpop.xlane.xlu0 %814 }
 0x3a4   : > { %v826_v42 = vadd.f32 %v1149_v40, %v815_v41 }
 0x3a6   : > { %829 = vst.msk [vmem:[%s1711_s14] sm:$0xff] %vm828_vm7, %v826_v42  ;;  %842 = sbr.rel (!%p1604_p5) target bundleno = 967 (0x3c7), region = 60 }
 0x3a7   : > { %v818_v43 = vpop.xlane.xlu0 %817 }
 0x3a8   : > { %v827_v44 = vadd.f32 %v1149_v40, %v818_v43 }
 0x3aa   : > { %830 = vst.msk [vmem:[%s1711_s14 + $0x8] sm:$0xff] %vm828_vm7, %v827_v44 }
 0x3ab   : > { %s1833_s27 = smov (!%p845_p11, %s844_s27), 2 }
 0x3ac   : > { %s1719_s22 = sshll.u32 %s1833_s27, 6 }
 0x3ad   : > { %s849_s26 = ssub.s32 128, %s1719_s22 }
 0x3ae   : > { %850 = vsyncadd %s1818_s19, %s849_s26  ;;  %p1154_p12 = scmp.ne.s32.totalorder %s1719_s22, 0  ;;  %s1177_s28 = sshll.u32 %s1587_s8, 7 }
 0x3af   : > { %s1729_s13 = scalar_lea.hbm %s1816_s9, %s1177_s28  ;;  %s855_s0 = sshll.u32 %s1706_s11, 4  ;;  %s1732_s0 = int_to_ptr.vmem [resolvable:$true] %s855_s0 }
 0x3b0   : > { %s1375_s27 = scalar_lea.vmem %s1732_s0, %s1719_s22  ;;  %s1505_s26 = smov [#allocation3]  }
 0x3b1   : > { %p1376_p13 = scmp.ne.s32.totalorder %s1732_s0, %s1375_s27  ;;  %s1379_s19 = sshll.u32 %s1505_s26, 4  ;;  %s1380_s19 = int_to_ptr.vmem [resolvable:$false] %s1379_s19 }
 0x3b2   : > { %s1381_s1 = scalar_lea.vmem %s1380_s19, 256  ;;  %p1382_p2 = scmp.lt.s32.totalorder %s1732_s0, %s1380_s19 }
 0x3b3   : > { %p1377_p0 = pnand %p1376_p13, %p1154_p12  ;;  %p1383_p3 = scmp.lt.s32.totalorder %s1381_s1, %s1375_s27 }
 0x3b5   : > { %p1378_p1 = pneg %p1377_p0  ;;  %p1384_p4 = por %p1383_p3, %p1382_p2 }
 0x3b7   : > { %p1385_p7 = pnand %p1384_p4, %p1378_p1 }
 0x3b9   : > { %1388 = shalt.err (!%p1385_p7)
}
 0x3ba   : > { %s1389_s11 = scalar_lea.hbm %s1729_s13, %s1719_s22  ;;  %s1393_s30 = scalar_lea.hbm %s1816_s9, 192 }
 0x3bb   : > { %p1390_p8 = scmp.ne.s32.totalorder %s1729_s13, %s1389_s11  ;;  %p1394_p11 = scmp.lt.s32.totalorder %s1729_s13, %s1816_s9 }
 0x3bc   : > { %p1395_p13 = scmp.lt.s32.totalorder %s1393_s30, %s1389_s11 }
 0x3bd   : > { %p1391_p9 = pnand %p1390_p8, %p1154_p12 }
 0x3be   : > { %p1396_p0 = por %p1395_p13, %p1394_p11 }
 0x3bf   : > { %p1392_p10 = pneg %p1391_p9 }
 0x3c1   : > { %p1397_p1 = pnand %p1396_p0, %p1392_p10 }
 0x3c3   : > { %1400 = shalt.err (!%p1397_p1)
}
 0x3c4   : > { %s1506_s1 = smov 64   ;;  %s1507_s27 = smov 4  }
 0x3c5   : > { %s1827_s2 = scalar_lea.sflag [#allocation4], %s1697_s21 }
 0x3c6   : > { %861 = dma.vmem_to_hbm [thread:$0]  (%p1154_p12), %s1732_s0, %s1719_s22, %s1729_s13, %s1827_s2, %s1506_s1, %s1506_s1, %s1507_s27  }
 0x3c7 PF: > { %864 = sbr.rel (!%p1604_p5) target bundleno = 1011 (0x3f3), region = 64  ;;  %s866_s11 = ssub.s32 (%p1604_p5), 3, %s1624_s12 }
 0x3c8   : > { %s1178_s28 = sshll.u32 (%p1604_p5), %s1587_s8, 4  ;;  %p867_p2 = scmp.lt.s32.totalorder (%p1604_p5), %s866_s11, 2 }
 0x3c9   : > { %s1766_s26 = scalar_lea.vmem (%p1604_p5), %s1817_s10, %s1178_s28  }
 0x3cc   : > { %s1835_s11 = smov (!%p867_p2, %s866_s11), 2 }
 0x3cd   : > { %s1159_s19 = sshll.u32 %s1835_s11, 7 }
 0x3ce   : > { %p1162_p3 = scmp.eq.s32.totalorder %s1159_s19, 0 }
 0x3cf   : > { %s1772_s0 = sshrl.u32 (!%p1162_p3), %s1835_s11, 1 }
 0x3d0   : > { %875 = sbr.rel (%p1162_p3) target bundleno = 1011 (0x3f3), region = 68  ;;  %p1163_p5 = scmp.le.s32.totalorder (!%p1162_p3), %s1772_s0, 0 }
 0x3d5   : > { %1057 = sbr.rel (%p1163_p5) target bundleno = 994 (0x3e2), region = 157  ;;  %s1469_s2 = smov (!%p1163_p5), %s1766_s26  }
 0x3d6   : > { %s1473_s8 = smov (!%p1163_p5), %s1711_s14   ;;  %s1477_s24 = smov (!%p1163_p5), 0  }
 0x3d7   : > { %s1481_s12 = smov (!%p1163_p5), 0  }
 0x3da LB: >> { %v940_v45 = vld [vmem:[%s1475_s8] sm:$0xff]  ;;  %v942_v46 = vld [vmem:[%s1475_s8 + $0x8] sm:$0xff]  ;;  %s944_s21 = sadd.s32 1, %s1479_s24  ;;  %s934_s12 = sadd.s32 1, %s1483_s12   ;;  %s1483_s12 = sphi %s1481_s12, %s934_s12   ;;  %s1479_s24 = sphi %s1477_s24, %s1478_s24   ;;  %s1475_s8 = sphi %s1473_s8, %s949_s8   ;;  %s1471_s2 = sphi %s1469_s2, %s950_s2  }
 0x3db   : >> { %941 = vst [vmem:[%s1471_s2] sm:$0xff] %v940_v45  ;;  %943 = vst [vmem:[%s1471_s2 + $0x8] sm:$0xff] %v942_v46  ;;  %p945_p12 = scmp.ge.s32.totalorder %s944_s21, %s1772_s0  ;;  %p933_p4 = scmp.ge.s32.totalorder %s934_s12, %s1772_s0 }
 0x3dd   : >> { %s1837_s21 = smov (%p945_p12, %s944_s21), 0  ;;  %936 = sbr.rel (!%p933_p4) target bundleno = 986 (0x3da), region = 163 }
 0x3de   : >> { %s1164_s22 = sshll.u32 %s1837_s21, 4  ;;  %s1478_s24 = smov %s1837_s21  }
 0x3df   : >> { %s949_s8 = scalar_lea.vmem %s1711_s14, %s1164_s22 [#allocation5]   ;;  %s950_s2 = scalar_lea.vmem %s1766_s26, %s1164_s22  }
 0x3e2 PF: > { %s1782_s13 = sand.u32 1, %s1835_s11   ;;  %s1179_s1 = sshll.u32 %s1772_s0, 4 }
 0x3e3   : > { %s955_s27 = scalar_lea.vmem %s1711_s14, %s1179_s1 [#allocation5]   ;;  %s957_s28 = scalar_lea.vmem %s1766_s26, %s1179_s1  }
 0x3e4   : > { %p1169_p7 = scmp.le.s32.totalorder %s1782_s13, 0 }
 0x3e5   : > { %s1485_s29 = smov (!%p1169_p7), %s957_s28   ;;  %s1489_s30 = smov (!%p1169_p7), %s955_s27  }
 0x3e6   : > { %1071 = sbr.rel (%p1169_p7) target bundleno = 1011 (0x3f3), region = 168  ;;  %s1493_s19 = smov (!%p1169_p7), 0  }
 0x3e7   : > { %s1497_s2 = smov (!%p1169_p7), 0  }
 0x3eb LB: >> { %v967_v47 = vld [vmem:[%s1491_s30] sm:$0xff]  ;;  %s969_s11 = sadd.s32 1, %s1495_s19  ;;  %s961_s2 = sadd.s32 1, %s1499_s2   ;;  %s1499_s2 = sphi %s1497_s2, %s961_s2   ;;  %s1495_s19 = sphi %s1493_s19, %s1494_s19   ;;  %s1491_s30 = sphi %s1489_s30, %s974_s30   ;;  %s1487_s29 = sphi %s1485_s29, %s975_s29  }
 0x3ec   : >> { %968 = vst [vmem:[%s1487_s29] sm:$0xff] %v967_v47  ;;  %p970_p8 = scmp.ge.s32.totalorder %s969_s11, %s1782_s13  ;;  %p960_p9 = scmp.ge.s32.totalorder %s961_s2, %s1782_s13 }
 0x3ee   : >> { %s1839_s11 = smov (%p970_p8, %s969_s11), 0  ;;  %963 = sbr.rel (!%p960_p9) target bundleno = 1003 (0x3eb), region = 174 }
 0x3ef   : >> { %s1170_s14 = sshll.u32 %s1839_s11, 3  ;;  %s1494_s19 = smov %s1839_s11  }
 0x3f0   : >> { %s974_s30 = scalar_lea.vmem %s955_s27, %s1170_s14 [#allocation5]   ;;  %s975_s29 = scalar_lea.vmem %s957_s28, %s1170_s14  }
 0x3f3 PF: > { %p1232_p10 = scmp.ge.s32.totalorder %s1467_s18, 2  ;;  %s987_s26 = sand.u32 1, %s1455_s15  }
 0x3f4   : > { %s988_s0 = scalar_lea.sflag [#allocation4], %s987_s26 }
 0x3f5   : > { %p1229_p11 = pnand %p1232_p10, %p1608_p6 }
 0x3f7   : > { %p1230_p13 = pneg %p1229_p11 }
 0x3f9   : > { %1450 = dma.done.wait (%p1230_p13), %s988_s0, 128  }
 0x3fa   : > { %1452 = vsyncadd (%p1230_p13), %s988_s0, 4294967168  ;;  %p23_p0 = scmp.ge.s32.totalorder %s1591_s20, 4   ;;  %s1828_s15 = smov %s1459_s16 }
 0x3fb   : > { %s1829_s16 = smov %s1463_s17  ;;  %s1830_s17 = smov %s1602_s23 }
 0x3fc   : > { %s1831_s18 = smov %s1591_s20  ;;  %25 = sbr.rel (!%p23_p0) target bundleno = 7 (0x7), region = 185 }
 0x401   :  { %1000 = vsyncpa [#allocation4], 1 }
 0x402   :  { %1002 = vsyncpa [#allocation4 + $0x1], 1 }

// kernel: tpu_custom_call.1
= control target key start
LH: loop header
LB: loop body
LE: loop exit
PB: predicated region body
PF: predicated region fallthrough
CT: control target
= control target key end

     0   :  { %s1807_s0 = inlined_call_operand.vmem [shape: f32[22,155], index: 0, kind: input, shape index: {}]   ;;  %s1808_s1 = inlined_call_operand.vmem [shape: bf16[155,128], index: 1, kind: input, shape index: {}]   ;;  %s1809_s2 = inlined_call_operand.vmem [shape: f32[1,128], index: 2, kind: input, shape index: {}]   ;;  %s1810_s3 = inlined_call_operand.vmem [shape: bf16[128,64], index: 3, kind: input, shape index: {}]   ;;  %s1811_s4 = inlined_call_operand.vmem [shape: f32[1,64], index: 4, kind: input, shape index: {}]   ;;  %s1812_s5 = inlined_call_operand.vmem [shape: bf16[64,32], index: 5, kind: input, shape index: {}]   ;;  %s1813_s6 = inlined_call_operand.vmem [shape: f32[1,32], index: 6, kind: input, shape index: {}]   ;;  %s1814_s7 = inlined_call_operand.vmem [shape: f32[1,32], index: 7, kind: input, shape index: {}]   ;;  %s1815_s8 = inlined_call_operand.<no memory space> [shape: f32[1,1], index: 8, kind: input, shape index: {}]   ;;  %s1816_s9 = inlined_call_operand.hbm [shape: bf16[22,32], index: 9, kind: output, shape index: {0}]   ;;  %s1817_s10 = inlined_call_operand.vmem [shape: f32[22,1], index: 10, kind: output, shape index: {1}]  }
   0x1   :  { %1819 = sst [smem:[#allocation7_spill]] %s1807_s0  ;;  %v16_v0 = vstv %s1815_s8 }
   0x2   :  { %1820 = sst [smem:[#allocation8_spill]] %s1808_s1  ;;  %17 = vst [vmem:[#allocation2] sm:$0x1] %v16_v0 }
   0x3   :  { %1821 = sst [smem:[#allocation9_spill]] %s1809_s2 }
   0x4   :  { %18 = vsyncpa [#allocation4], 0 }
   0x5   :  { %20 = vsyncpa [#allocation4 + $0x1], 0  ;;  %s1566_s15 = smov 0   ;;  %s1568_s16 = smov 0  }
   0x6   :  { %s1570_s17 = smov 0   ;;  %s1572_s18 = smov 0  }
   0x7 LB: > { %s1587_s8 = sadd.s32 4294967295, %s1467_s18   ;;  %s1110_s19 = sadd.s32 4294967294, %s1467_s18   ;;  %s1467_s18 = sphi %s1572_s18, %s1831_s18   ;;  %s1463_s17 = sphi %s1570_s17, %s1830_s17   ;;  %s1459_s16 = sphi %s1568_s16, %s1829_s16   ;;  %s1455_s15 = sphi %s1566_s15, %s1828_s15  }
   0x8   : > { %s1591_s20 = sadd.s32 1, %s1467_s18   ;;  %s227_s21 = sadd.s32 1, %s1463_s17 }
   0x9   : > { %s224_s22 = ssub.s32 %s1467_s18, %s1591_s20  ;;  %p237_p0 = scmp.ne.s32.totalorder %s1463_s17, %s1459_s16 }
   0xa   : > { %p225_p1 = scmp.eq.s32.totalorder %s224_s22, 0  ;;  %p238_p2 = scmp.eq.s32.totalorder %s1587_s8, 1 }
   0xb   : > { %p243_p3 = scmp.ne.s32.totalorder %s1459_s16, %s1455_s15  ;;  %p244_p4 = scmp.eq.s32.totalorder %s1110_s19, 1 }
   0xc   : > { %s1602_s23 = scalar_select %p225_p1, %s1463_s17, %s227_s21  }
   0xd   : > { %p1604_p5 = por %p238_p2, %p237_p0  ;;  %p1608_p6 = por %p244_p4, %p243_p3 }
   0xe   : > { %p1113_p7 = scmp.ge.s32.totalorder %s1467_s18, 1  ;;  %p332_p8 = scmp.lt.s32.totalorder %s1467_s18, 3 }
  0x10   : > { %p333_p9 = pnand %p1113_p7, %p332_p8 }
  0x11   : > { %s1824_s1 = sld [smem:[#allocation8_spill]] (!%p333_p9)  ;;  %s1624_s12 = sshll.u32 (!%p333_p9), %s1587_s8, 1 }
  0x12   : > { %336 = sbr.rel (%p333_p9) target bundleno = 1011 (0x3f3), region = 56  ;;  %p386_p10 = scmp.lt.s32.totalorder (!%p333_p9), %s1624_s12, 2 }
  0x13   : > { %s1825_s0 = sld [smem:[#allocation7_spill]] (!%p333_p9) }
  0x14   : > { %s1826_s2 = sld [smem:[#allocation9_spill]] (!%p333_p9) }
  0x17   : > { %v1335_v1 = vld [vmem:[%s1824_s1 + $0x38] sm:$0xff]   ;;  %v1501_v2 = vmov 0   ;;  %v1336_v3 = vld [vmem:[%s1824_s1 + $0x30] sm:$0xff]   ;;  %v1337_v4 = vld [vmem:[%s1824_s1 + $0x28] sm:$0xff]   ;;  %s387_s13 = scalar_select %p386_p10, %s1624_s12, 2  ;;  %vm500_vm0 = vcmask 220160  }
  0x18   : > { %511 = vmatprep.subr.bf16.mxu0 %v1501_v2  ;;  %v1338_v5 = vld [vmem:[%s1824_s1 + $0x20] sm:$0xff]   ;;  %v1339_v8 = vld [vmem:[%s1824_s1 + $0x18] sm:$0xff]   ;;  %v1340_v10 = vld [vmem:[%s1824_s1 + $0x10] sm:$0xff]   ;;  %vm504_vm1 = vcmask 1044480   ;;  %vm505_vm2 = vcmask 1045504   ;;  %v1502_v12 = vmov 65535  }
  0x19   : > { %512 = vmatpush1.bf16.msra.mxu0 %v1335_v1  ;;  %s1174_s21 = sshll.u32 %s387_s13, 4  ;;  %v1341_v11 = vld [vmem:[%s1824_s1 + $0x8] sm:$0xff]   ;;  %v506_v13 = vsel %vm504_vm1, 4294967295, %v1502_v12  ;;  %v1342_v14 = vld [vmem:[%s1824_s1] sm:$0xff]   ;;  %v1345_v22 = vld [vmem:[%s1810_s3 + $0x38] sm:$0xff]   ;;  %v1503_v23 = vmov 0.0  }
  0x1a   : > { %513 = vmatprep.subr.bf16.mxu0 %v1501_v2  ;;  %s390_s27 = scalar_lea.vmem %s1825_s0, %s1174_s21  ;;  %v1343_v15 = vld [vmem:[%s1824_s1 + $0x48] sm:$0x3f]   ;;  %v507_v16 = vsel %vm505_vm2, %v506_v13, 0  ;;  %v1344_v18 = vld [vmem:[%s1824_s1 + $0x40] sm:$0xff]   ;;  %1195 = vmatprep.subr.bf16.mxu1 %v1503_v23  ;;  %v1346_v24 = vld [vmem:[%s1810_s3 + $0x30] sm:$0xff]   ;;  %vm1504_vm3 = vmmov 0  }
  0x1b   : > { %v409_v6 = vld [vmem:[%s390_s27 + $0x8] sm:$0xff]  ;;  %v411_v7 = vld [vmem:[%s390_s27 + $0x18] sm:$0xff]  ;;  %v509_v17 = vand.u32 %v1343_v15, %v507_v16  ;;  %v408_v19 = vld [vmem:[%s390_s27] sm:$0xff]  ;;  %1196 = vmatpush3.bf16.msra.mxu1 %v1345_v22  ;;  %1211 = vmatprep.mubr.msk.bf16.mxu1 %vm1504_vm3, %v1503_v23  ;;  %vm733_vm4 = vcmask 523264   ;;  %s1697_s21 = sand.u32 1, %s1459_s16   ;;  %vm800_vm5 = vcmask 257024  }
  0x1c   : > { %v413_v9 = vpack.c.bf16 %v411_v7, %v409_v6  ;;  %v410_v20 = vld [vmem:[%s390_s27 + $0x10] sm:$0xff]  ;;  %1197 = vmatprep.subr.bf16.mxu1 %v1503_v23  ;;  %v1347_v25 = vld [vmem:[%s1810_s3 + $0x28] sm:$0xff]   ;;  %v1348_v26 = vld [vmem:[%s1810_s3 + $0x20] sm:$0xff]   ;;  %s1114_s28 = sshll.u32 %s1697_s21, 3  ;;  %vm812_vm6 = vcmask 261120   ;;  %s1115_s13 = sshll.u32 %s1697_s21, 4 }
  0x1d   : > { %514 = vmatpush1.bf16.msra.mxu0 %v1336_v3  ;;  %v412_v21 = vpack.c.bf16 %v410_v20, %v408_v19  ;;  %v1349_v27 = vld [vmem:[%s1810_s3 + $0x18] sm:$0xff]   ;;  %v1350_v28 = vld [vmem:[%s1810_s3 + $0x10] sm:$0xff]   ;;  %v1351_v29 = vld [vmem:[%s1810_s3 + $0x8] sm:$0xff]   ;;  %s1706_s11 = scalar_lea.vmem [#allocation3], %s1114_s28  ;;  %vm828_vm7 = vcmask 7168   ;;  %s1711_s14 = scalar_lea.vmem [#allocation5], %s1115_s13  }
  0x1e   : > { %515 = vmatprep.subr.bf16.mxu0 %v1501_v2  ;;  %1130 = vmatprep.mubr.msk.bf16.mxu0 %vm500_vm0, %v413_v9  ;;  %v1352_v30 = vld [vmem:[%s1810_s3] sm:$0xff]   ;;  %v1353_v52 = vld [vmem:[%s1812_s5 + $0x18] sm:$0xff]   ;;  %v1354_v53 = vld [vmem:[%s1812_s5 + $0x10] sm:$0xff]   ;;  %s1818_s19 = scalar_lea.sflag [#allocation4], %s1697_s21  ;;  %s844_s27 = ssub.s32 (%p1604_p5), 3, %s1624_s12 }
  0x1f   : > { %1198 = vmatpush3.bf16.msra.mxu1 %v1346_v24  ;;  %v1119_v31 = vld [vmem:[%s1826_s2] ss:$0 sm:$0xff]  ;;  %v1355_v54 = vld [vmem:[%s1812_s5 + $0x8] sm:$0xff]   ;;  %p845_p11 = scmp.lt.s32.totalorder (%p1604_p5), %s844_s27, 2 }
  0x20   : > { %1199 = vmatprep.subr.bf16.mxu1 %v1503_v23  ;;  %v1356_v55 = vld [vmem:[%s1812_s5] sm:$0xff]  }
  0x21   : > { %516 = vmatpush1.bf16.msra.mxu0 %v1337_v4  ;;  %v1131_v56 = vld [vmem:[%s1811_s4] ss:$0 sm:$0xff] }
  0x22   : > { %517 = vmatprep.subr.bf16.mxu0 %v1501_v2  ;;  %v1140_v13 = vld [vmem:[%s1813_s6] ss:$0 sm:$0xff] }
  0x23   : > { %1200 = vmatpush3.bf16.msra.mxu1 %v1347_v25 }
  0x24   : > { %1201 = vmatprep.subr.bf16.mxu1 %v1503_v23 }
  0x25   : > { %518 = vmatpush1.bf16.msra.mxu0 %v1338_v5 }
  0x26   : > { %519 = vmatprep.subr.bf16.mxu0 %v1501_v2 }
  0x27   : > { %1202 = vmatpush3.bf16.msra.mxu1 %v1348_v26 }
  0x28   : > { %1203 = vmatprep.subr.bf16.mxu1 %v1503_v23 }
  0x29   : > { %520 = vmatpush1.bf16.msra.mxu0 %v1339_v8 }
  0x2a   : > { %521 = vmatprep.subr.bf16.mxu0 %v1501_v2 }
  0x2b   : > { %1204 = vmatpush3.bf16.msra.mxu1 %v1349_v27 }
  0x2c   : > { %1205 = vmatprep.subr.bf16.mxu1 %v1503_v23 }
  0x2d   : > { %522 = vmatpush1.bf16.msra.mxu0 %v1340_v10 }
  0x2e   : > { %523 = vmatprep.subr.bf16.mxu0 %v1501_v2 }
  0x2f   : > { %1206 = vmatpush3.bf16.msra.mxu1 %v1350_v28 }
  0x30   : > { %1207 = vmatprep.subr.bf16.mxu1 %v1503_v23 }
  0x31   : > { %524 = vmatpush1.bf16.msra.mxu0 %v1341_v11 }
  0x32   : > { %525 = vmatprep.subr.bf16.mxu0 %v1501_v2 }
  0x33   : > { %1208 = vmatpush3.bf16.msra.mxu1 %v1351_v29 }
  0x34   : > { %1209 = vmatprep.subr.bf16.mxu1 %v1503_v23 }
  0x35   : > { %526 = vmatpush1.bf16.msra.mxu0 %v1342_v14 }
  0x36   : > { %539 = vmatprep.subr.bf16.mxu0 %v1501_v2 }
  0x37   : > { %1210 = vmatpush3.bf16.msra.mxu1 %v1352_v30 }
  0x38   : > { %1215 = vmatprep.subr.bf16.mxu1 %v1503_v23 }
  0x39   : > { %540 = vmatpush2.bf16.msra.mxu0 %v509_v17 }
  0x3a   : > { %541 = vmatprep.subr.bf16.mxu0 %v1501_v2 }
  0x3d   : > { %542 = vmatpush2.bf16.msra.mxu0 %v1344_v18 }
  0x40   : > { %544 = vmatmul.mubr.bf16.vlgmr.msra.gmra.mxu0 %v412_v21 }
 0x100   : > { %v545_v32 = vpop.f32.mrf.mxu0 }
 0x101   : > { %v546_v34 = vadd.f32 %v1119_v31, %v545_v32  ;;  %v1148_v32 = vld [vmem:[%s1814_s7] ss:$0 sm:$0xff] }
 0x102   : > { %v547_v33 = vpop.f32.mrf.mxu0 }
 0x103   : > { %v552_v38 = vsub.f32 0.0, %v546_v34 }
 0x104   : > { %v548_v35 = vpop.f32.mrf.mxu0 }
 0x105   : > { %v549_v36 = vadd.f32 %v1119_v31, %v548_v35 }
 0x106   : > { %v550_v37 = vpop.f32.mrf.mxu0 }
 0x107   : > { %v553_v39 = vsub.f32 0.0, %v549_v36 }
 0x109   : > { %v554_v40 = vpack.c.bf16 %v553_v39, %v552_v38 }
 0x10b   : > { %v556_v41 = vmul.bf16 1069105081, %v554_v40  ;;  %v1149_v40 = vld [vmem:[#allocation2] ss:$0 sm:$0xff] }
 0x10d   : > { %1357 = vpow.bf16 %v556_v41 }
 0x11b   : > { %v1358_v42 = vpop.eup %1357 }
 0x11c   : > { %v558_v43 = vunpack.c.l.bf16 %v1358_v42  ;;  %v559_v44 = vunpack.c.h.bf16 %v1358_v42 }
 0x11e   : > { %v561_v45 = vadd.f32 1.0, %v559_v44  ;;  %v560_v46 = vadd.f32 1.0, %v558_v43 }
 0x120   : > { %1359 = vrcp.f32 %v561_v45 }
 0x121   : > { %1361 = vrcp.f32 %v560_v46 }
 0x12d   : > { %v1360_v47 = vpop.eup %1359 }
 0x12e   : > { %v1362_v48 = vpop.eup %1361  ;;  %v565_v49 = vmul.f32 %v1360_v47, %v549_v36 }
 0x12f   : > { %v564_v50 = vmul.f32 %v1362_v48, %v546_v34 }
 0x131   : > { %v566_v51 = vpack.c.bf16 %v565_v49, %v564_v50 }
 0x133   : > { %1212 = vmatmul.mubr.bf16.vlgmr.msra.gmra.mxu1 %v566_v51 }
 0x134   : > { %1223 = vmatprep.mubr.msk.bf16.mxu1 %vm1504_vm3, %v1503_v23  ;;  %1216 = vmatpush3.bf16.msra.mxu1 %v1353_v52 }
 0x135   : > { %1217 = vmatprep.subr.bf16.mxu1 %v1503_v23 }
 0x138   : > { %1218 = vmatpush3.bf16.msra.mxu1 %v1354_v53 }
 0x139   : > { %1219 = vmatprep.subr.bf16.mxu1 %v1503_v23 }
 0x13c   : > { %1220 = vmatpush3.bf16.msra.mxu1 %v1355_v54 }
 0x13d   : > { %1221 = vmatprep.subr.bf16.mxu1 %v1503_v23 }
 0x140   : > { %1222 = vmatpush3.bf16.msra.mxu1 %v1356_v55 }
 0x1f3   : > { %v672_v57 = vpop.f32.mrf.mxu1 }
 0x1f4   : > { %v673_v59 = vadd.f32 %v1131_v56, %v672_v57 }
 0x1f5   : > { %v1213_v58 = vpop.f32.mrf.mxu1 }
 0x1f6   : > { %v679_v63 = vsub.f32 0.0, %v673_v59 }
 0x1f7   : > { %v675_v60 = vpop.f32.mrf.mxu1 }
 0x1f8   : > { %v676_v61 = vadd.f32 %v1131_v56, %v675_v60 }
 0x1f9   : > { %v1214_v62 = vpop.f32.mrf.mxu1 }
 0x1fa   : > { %v680_v0 = vsub.f32 0.0, %v676_v61 }
 0x1fc   : > { %v681_v1 = vpack.c.bf16 %v680_v0, %v679_v63 }
 0x1fe   : > { %v683_v2 = vmul.bf16 1069105081, %v681_v1 }
 0x200   : > { %1363 = vpow.bf16 %v683_v2 }
 0x20e   : > { %v1364_v3 = vpop.eup %1363 }
 0x20f   : > { %v685_v4 = vunpack.c.l.bf16 %v1364_v3  ;;  %v686_v5 = vunpack.c.h.bf16 %v1364_v3 }
 0x211   : > { %v687_v6 = vadd.f32 1.0, %v685_v4  ;;  %v688_v7 = vadd.f32 1.0, %v686_v5 }
 0x213   : > { %1365 = vrcp.f32 %v687_v6 }
 0x214   : > { %1367 = vrcp.f32 %v688_v7 }
 0x220   : > { %v1366_v8 = vpop.eup %1365 }
 0x221   : > { %v1368_v9 = vpop.eup %1367  ;;  %v691_v10 = vmul.f32 %v1366_v8, %v673_v59 }
 0x222   : > { %v692_v11 = vmul.f32 %v1368_v9, %v676_v61 }
 0x224   : > { %v693_v12 = vpack.c.bf16 %v692_v11, %v691_v10 }
 0x226   : > { %1224 = vmatmul.mubr.msk.bf16.vlgmr.msra.gmra.mxu1 %vm733_vm4, %v693_v12 }
 0x2e6   : > { %v771_v14 = vpop.f32.mrf.mxu1 }
 0x2e7   : > { %v772_v16 = vadd.f32 %v1140_v13, %v771_v14 }
 0x2e8   : > { %v1225_v15 = vpop.f32.mrf.mxu1 }
 0x2e9   : > { %v778_v20 = vsub.f32 0.0, %v772_v16 }
 0x2ea   : > { %v774_v17 = vpop.f32.mrf.mxu1 }
 0x2eb   : > { %v775_v18 = vadd.f32 %v1140_v13, %v774_v17 }
 0x2ec   : > { %v1226_v19 = vpop.f32.mrf.mxu1 }
 0x2ed   : > { %v779_v21 = vsub.f32 0.0, %v775_v18 }
 0x2ef   : > { %v780_v22 = vpack.c.bf16 %v779_v21, %v778_v20 }
 0x2f1   : > { %v782_v23 = vmul.bf16 1069105081, %v780_v22 }
 0x2f3   : > { %1369 = vpow.bf16 %v782_v23 }
 0x301   : > { %v1370_v24 = vpop.eup %1369 }
 0x302   : > { %v785_v25 = vunpack.c.h.bf16 %v1370_v24  ;;  %v784_v26 = vunpack.c.l.bf16 %v1370_v24 }
 0x304   : > { %v787_v27 = vadd.f32 1.0, %v785_v25  ;;  %v786_v28 = vadd.f32 1.0, %v784_v26 }
 0x306   : > { %1371 = vrcp.f32 %v787_v27 }
 0x307   : > { %1373 = vrcp.f32 %v786_v28 }
 0x313   : > { %v1372_v29 = vpop.eup %1371 }
 0x314   : > { %v1374_v30 = vpop.eup %1373  ;;  %v791_v31 = vmul.f32 %v1372_v29, %v775_v18 }
 0x315   : > { %v790_v33 = vmul.f32 %v1374_v30, %v772_v16 }
 0x316   : > { %v1176_v34 = vpack.c.bf16 %v791_v31, %v791_v31  ;;  %v811_v38 = vmul.f32 %v1148_v32, %v791_v31 }
 0x317   : > { %v810_v35 = vmul.f32 %v1148_v32, %v790_v33  ;;  %v1175_v36 = vpack.c.bf16 %v790_v33, %v790_v33 }
 0x318   : > { %802 = vst.msk [vmem:[%s1706_s11 + $0x4] sm:$0xf] %vm800_vm5, %v1176_v34  ;;  %v816_v39 = vsel %vm812_vm6, %v811_v38, 0.0 }
 0x319   : > { %v813_v37 = vsel %vm812_vm6, %v810_v35, 0.0  ;;  %801 = vst.msk [vmem:[%s1706_s11] sm:$0xf] %vm800_vm5, %v1175_v36 }
 0x31a   : > { %814 = vadd.xlane.f32.xlu0 %v813_v37 }
 0x31e   : > { %817 = vadd.xlane.f32.xlu0 %v816_v39 }
 0x3a3   : > { %v815_v41 = vpop.xlane.xlu0 %814 }
 0x3a4   : > { %v826_v42 = vadd.f32 %v1149_v40, %v815_v41 }
 0x3a6   : > { %829 = vst.msk [vmem:[%s1711_s14] sm:$0xff] %vm828_vm7, %v826_v42  ;;  %842 = sbr.rel (!%p1604_p5) target bundleno = 967 (0x3c7), region = 60 }
 0x3a7   : > { %v818_v43 = vpop.xlane.xlu0 %817 }
 0x3a8   : > { %v827_v44 = vadd.f32 %v1149_v40, %v818_v43 }
 0x3aa   : > { %830 = vst.msk [vmem:[%s1711_s14 + $0x8] sm:$0xff] %vm828_vm7, %v827_v44 }
 0x3ab   : > { %s1833_s27 = smov (!%p845_p11, %s844_s27), 2 }
 0x3ac   : > { %s1719_s22 = sshll.u32 %s1833_s27, 6 }
 0x3ad   : > { %s849_s26 = ssub.s32 128, %s1719_s22 }
 0x3ae   : > { %850 = vsyncadd %s1818_s19, %s849_s26  ;;  %p1154_p12 = scmp.ne.s32.totalorder %s1719_s22, 0  ;;  %s1177_s28 = sshll.u32 %s1587_s8, 7 }
 0x3af   : > { %s1729_s13 = scalar_lea.hbm %s1816_s9, %s1177_s28  ;;  %s855_s0 = sshll.u32 %s1706_s11, 4  ;;  %s1732_s0 = int_to_ptr.vmem [resolvable:$true] %s855_s0 }
 0x3b0   : > { %s1375_s27 = scalar_lea.vmem %s1732_s0, %s1719_s22  ;;  %s1505_s26 = smov [#allocation3]  }
 0x3b1   : > { %p1376_p13 = scmp.ne.s32.totalorder %s1732_s0, %s1375_s27  ;;  %s1379_s19 = sshll.u32 %s1505_s26, 4  ;;  %s1380_s19 = int_to_ptr.vmem [resolvable:$false] %s1379_s19 }
 0x3b2   : > { %s1381_s1 = scalar_lea.vmem %s1380_s19, 256  ;;  %p1382_p2 = scmp.lt.s32.totalorder %s1732_s0, %s1380_s19 }
 0x3b3   : > { %p1377_p0 = pnand %p1376_p13, %p1154_p12  ;;  %p1383_p3 = scmp.lt.s32.totalorder %s1381_s1, %s1375_s27 }
 0x3b5   : > { %p1378_p1 = pneg %p1377_p0  ;;  %p1384_p4 = por %p1383_p3, %p1382_p2 }
 0x3b7   : > { %p1385_p7 = pnand %p1384_p4, %p1378_p1 }
 0x3b9   : > { %1388 = shalt.err (!%p1385_p7)
}
 0x3ba   : > { %s1389_s11 = scalar_lea.hbm %s1729_s13, %s1719_s22  ;;  %s1393_s30 = scalar_lea.hbm %s1816_s9, 192 }
 0x3bb   : > { %p1390_p8 = scmp.ne.s32.totalorder %s1729_s13, %s1389_s11  ;;  %p1394_p11 = scmp.lt.s32.totalorder %s1729_s13, %s1816_s9 }
 0x3bc   : > { %p1395_p13 = scmp.lt.s32.totalorder %s1393_s30, %s1389_s11 }
 0x3bd   : > { %p1391_p9 = pnand %p1390_p8, %p1154_p12 }
 0x3be   : > { %p1396_p0 = por %p1395_p13, %p1394_p11 }
 0x3bf   : > { %p1392_p10 = pneg %p1391_p9 }
 0x3c1   : > { %p1397_p1 = pnand %p1396_p0, %p1392_p10 }
 0x3c3   : > { %1400 = shalt.err (!%p1397_p1)
}
 0x3c4   : > { %s1506_s1 = smov 64   ;;  %s1507_s27 = smov 4  }
 0x3c5   : > { %s1827_s2 = scalar_lea.sflag [#allocation4], %s1697_s21 }
 0x3c6   : > { %861 = dma.vmem_to_hbm [thread:$0]  (%p1154_p12), %s1732_s0, %s1719_s22, %s1729_s13, %s1827_s2, %s1506_s1, %s1506_s1, %s1507_s27  }
 0x3c7 PF: > { %864 = sbr.rel (!%p1604_p5) target bundleno = 1011 (0x3f3), region = 64  ;;  %s866_s11 = ssub.s32 (%p1604_p5), 3, %s1624_s12 }
 0x3c8   : > { %s1178_s28 = sshll.u32 (%p1604_p5), %s1587_s8, 4  ;;  %p867_p2 = scmp.lt.s32.totalorder (%p1604_p5), %s866_s11, 2 }
 0x3c9   : > { %s1766_s26 = scalar_lea.vmem (%p1604_p5), %s1817_s10, %s1178_s28  }
 0x3cc   : > { %s1835_s11 = smov (!%p867_p2, %s866_s11), 2 }
 0x3cd   : > { %s1159_s19 = sshll.u32 %s1835_s11, 7 }
 0x3ce   : > { %p1162_p3 = scmp.eq.s32.totalorder %s1159_s19, 0 }
 0x3cf   : > { %s1772_s0 = sshrl.u32 (!%p1162_p3), %s1835_s11, 1 }
 0x3d0   : > { %875 = sbr.rel (%p1162_p3) target bundleno = 1011 (0x3f3), region = 68  ;;  %p1163_p5 = scmp.le.s32.totalorder (!%p1162_p3), %s1772_s0, 0 }
 0x3d5   : > { %1057 = sbr.rel (%p1163_p5) target bundleno = 994 (0x3e2), region = 157  ;;  %s1469_s2 = smov (!%p1163_p5), %s1766_s26  }
 0x3d6   : > { %s1473_s8 = smov (!%p1163_p5), %s1711_s14   ;;  %s1477_s24 = smov (!%p1163_p5), 0  }
 0x3d7   : > { %s1481_s12 = smov (!%p1163_p5), 0  }
 0x3da LB: >> { %v940_v45 = vld [vmem:[%s1475_s8] sm:$0xff]  ;;  %v942_v46 = vld [vmem:[%s1475_s8 + $0x8] sm:$0xff]  ;;  %s944_s21 = sadd.s32 1, %s1479_s24  ;;  %s934_s12 = sadd.s32 1, %s1483_s12   ;;  %s1483_s12 = sphi %s1481_s12, %s934_s12   ;;  %s1479_s24 = sphi %s1477_s24, %s1478_s24   ;;  %s1475_s8 = sphi %s1473_s8, %s949_s8   ;;  %s1471_s2 = sphi %s1469_s2, %s950_s2  }
 0x3db   : >> { %941 = vst [vmem:[%s1471_s2] sm:$0xff] %v940_v45  ;;  %943 = vst [vmem:[%s1471_s2 + $0x8] sm:$0xff] %v942_v46  ;;  %p945_p12 = scmp.ge.s32.totalorder %s944_s21, %s1772_s0  ;;  %p933_p4 = scmp.ge.s32.totalorder %s934_s12, %s1772_s0 }
 0x3dd   : >> { %s1837_s21 = smov (%p945_p12, %s944_s21), 0  ;;  %936 = sbr.rel (!%p933_p4) target bundleno = 986 (0x3da), region = 163 }
 0x3de   : >> { %s1164_s22 = sshll.u32 %s1837_s21, 4  ;;  %s1478_s24 = smov %s1837_s21  }
 0x3df   : >> { %s949_s8 = scalar_lea.vmem %s1711_s14, %s1164_s22 [#allocation5]   ;;  %s950_s2 = scalar_lea.vmem %s1766_s26, %s1164_s22  }
 0x3e2 PF: > { %s1782_s13 = sand.u32 1, %s1835_s11   ;;  %s1179_s1 = sshll.u32 %s1772_s0, 4 }
 0x3e3   : > { %s955_s27 = scalar_lea.vmem %s1711_s14, %s1179_s1 [#allocation5]   ;;  %s957_s28 = scalar_lea.vmem %s1766_s26, %s1179_s1  }
 0x3e4   : > { %p1169_p7 = scmp.le.s32.totalorder %s1782_s13, 0 }
 0x3e5   : > { %s1485_s29 = smov (!%p1169_p7), %s957_s28   ;;  %s1489_s30 = smov (!%p1169_p7), %s955_s27  }
 0x3e6   : > { %1071 = sbr.rel (%p1169_p7) target bundleno = 1011 (0x3f3), region = 168  ;;  %s1493_s19 = smov (!%p1169_p7), 0  }
 0x3e7   : > { %s1497_s2 = smov (!%p1169_p7), 0  }
 0x3eb LB: >> { %v967_v47 = vld [vmem:[%s1491_s30] sm:$0xff]  ;;  %s969_s11 = sadd.s32 1, %s1495_s19  ;;  %s961_s2 = sadd.s32 1, %s1499_s2   ;;  %s1499_s2 = sphi %s1497_s2, %s961_s2   ;;  %s1495_s19 = sphi %s1493_s19, %s1494_s19   ;;  %s1491_s30 = sphi %s1489_s30, %s974_s30   ;;  %s1487_s29 = sphi %s1485_s29, %s975_s29  }
 0x3ec   : >> { %968 = vst [vmem:[%s1487_s29] sm:$0xff] %v967_v47  ;;  %p970_p8 = scmp.ge.s32.totalorder %s969_s11, %s1782_s13  ;;  %p960_p9 = scmp.ge.s32.totalorder %s961_s2, %s1782_s13 }
 0x3ee   : >> { %s1839_s11 = smov (%p970_p8, %s969_s11), 0  ;;  %963 = sbr.rel (!%p960_p9) target bundleno = 1003 (0x3eb), region = 174 }
 0x3ef   : >> { %s1170_s14 = sshll.u32 %s1839_s11, 3  ;;  %s1494_s19 = smov %s1839_s11  }
 0x3f0   : >> { %s974_s30 = scalar_lea.vmem %s955_s27, %s1170_s14 [#allocation5]   ;;  %s975_s29 = scalar_lea.vmem %s957_s28, %s1170_s14  }
 0x3f3 PF: > { %p1232_p10 = scmp.ge.s32.totalorder %s1467_s18, 2  ;;  %s987_s26 = sand.u32 1, %s1455_s15  }
 0x3f4   : > { %s988_s0 = scalar_lea.sflag [#allocation4], %s987_s26 }
 0x3f5   : > { %p1229_p11 = pnand %p1232_p10, %p1608_p6 }
 0x3f7   : > { %p1230_p13 = pneg %p1229_p11 }
 0x3f9   : > { %1450 = dma.done.wait (%p1230_p13), %s988_s0, 128  }
 0x3fa   : > { %1452 = vsyncadd (%p1230_p13), %s988_s0, 4294967168  ;;  %p23_p0 = scmp.ge.s32.totalorder %s1591_s20, 4   ;;  %s1828_s15 = smov %s1459_s16 }
 0x3fb   : > { %s1829_s16 = smov %s1463_s17  ;;  %s1830_s17 = smov %s1602_s23 }
 0x3fc   : > { %s1831_s18 = smov %s1591_s20  ;;  %25 = sbr.rel (!%p23_p0) target bundleno = 7 (0x7), region = 185 }
 0x401   :  { %1000 = vsyncpa [#allocation4], 1 }
 0x402   :  { %1002 = vsyncpa [#allocation4 + $0x1], 1 }

</bundles_post_ra>
